<compile_context>
chip_gen: v6e
topology: v6e:2x2x1
jax: 0.10.0
libtpu: 0.0.40
codegen_flags: <defaults>
</compile_context>

<pallas_src>
import jax
import jax.numpy as jnp
from jax import lax
from jax.experimental import pallas as pl
from jax.experimental.pallas import tpu as pltpu

C_IN = 2048       # backbone output channels (fixed by the module definition)
C_MID = 128       # predict conv1 output channels
C_OUT = 6         # predict conv2 output channels
C_OUT_PAD = 128   # lane-dense padded output width (sliced back to 6 in the wrapper)
BN_EPS = 1e-5     # nn.BatchNorm2d default


def _round_up(x, m):
    return (x + m - 1) // m * m


def _predict_head_kernel(x_ref, w1_ref, w2_ref, b2_ref, out_ref, pooled_ref):
    # x_ref:      (Bt, C_IN, HW)      batch tile of NCHW features (spatial flattened)
    # w1_ref:     (C_MID, C_IN)       1x1 conv #1 weight (same dtype as x)
    # w2_ref:     (C_MID, C_OUT_PAD)  conv #2 weight^T with BN scale and 1/HW folded in (f32)
    # b2_ref:     (1, C_OUT_PAD)      conv #2 bias with BN shift folded in (f32)
    # out_ref:    (Bt, 1, C_OUT_PAD)
    # pooled_ref: (Bt, C_MID)         VMEM scratch for per-image pooled rows (f32)
    bt = x_ref.shape[0]
    w1 = w1_ref[...]                                          # loop-invariant, loaded once

    def body(b, carry):
        xb = x_ref[b]                                         # (C_IN, HW)
        # Conv2d(2048 -> 128, 1x1, bias=False): channels contract on the MXU, f32 acc.
        y = jnp.dot(w1, xb, preferred_element_type=jnp.float32)   # (C_MID, HW) f32
        # Swish in f32 (EUP sigmoid + VPU mul).
        y = y * jax.nn.sigmoid(y)
        # Global average pool as a plain sum: 1/HW and the BN per-channel scale are
        # folded into w2_ref; the BN shift is folded into b2_ref.
        pooled_ref[b, :] = jnp.sum(y, axis=-1)                # (C_MID,)
        return carry

    lax.fori_loop(0, bt, body, 0)

    pooled = pooled_ref[...]                                  # (Bt, C_MID) f32
    out = jnp.dot(pooled, w2_ref[...], preferred_element_type=jnp.float32) + b2_ref[...]
    out_ref[...] = out.reshape(out_ref.shape).astype(out_ref.dtype)


def _tpu_config():
    """Per-generation (feature-block byte budget, vmem_limit_bytes, prefer >=2 grid steps).

    vmem_limit is sized for: 2 x feature block (double-buffered) + ~1.5 MiB fixed
    (double-buffered weights, f32 Swish temp, pooled scratch, out blocks) + compiler
    headroom, while staying well inside physical VMEM (128 MiB v5e/v6e, 64 MiB v7x).
    """
    kind = ""
    try:
        kind = jax.devices()[0].device_kind.lower()
    except Exception:
        pass
    if "v7" in kind:
        # 64 MiB physical VMEM, 2 TensorCores -> keep >=2 grid steps for megacore.
        return 16 << 20, 44 << 20, True
    if "v6" in kind:
        # 128 MiB physical, single TC -> big tiles, fewer steps.
        return 32 << 20, 80 << 20, False
    if "v5" in kind and ("lite" in kind or "5e" in kind):
        # v5e: 128 MiB physical but slower HBM; modest tiles, raised scoped limit.
        return 8 << 20, 32 << 20, False
    if "v5" in kind or "v4" in kind:
        return 16 << 20, 48 << 20, False
    # Unknown backend: conservative tile, leave the scoped-VMEM default alone.
    return 8 << 20, None, False


def _pick_block_b(B, hw, itemsize, feat_budget, prefer_multi_step):
    """Largest divisor of B whose (lane-padded) feature block fits the per-block budget.
    On v7x only, prefer leaving >= 2 grid steps so both TensorCores stay busy."""
    hw_pad = _round_up(hw, 128)
    per_image = C_IN * hw_pad * itemsize
    cap = max(1, feat_budget // per_image)
    cands = [bt for bt in range(1, min(B, cap) + 1) if B % bt == 0]
    if prefer_multi_step:
        multi = [bt for bt in cands if B // bt >= 2]
        if multi:
            return max(multi)
    return max(cands)


@jax.jit
def predict_head_pallas(features, w1, gamma, beta, running_mean, running_var, w2, b2):
    """features: [B, 2048, H, W] (NCHW, like the PyTorch backbone output; bf16 or f32).
    Returns [B, 6, 1, 1] (float32)."""
    B, C, H, W = features.shape
    assert C == C_IN
    hw = H * W

    # NCHW -> [B, C, HW]: pure reshape, no transpose / no extra HBM pass.
    x = features.reshape(B, C_IN, hw)
    if x.dtype != jnp.bfloat16 and x.dtype != jnp.float32:
        x = x.astype(jnp.bfloat16)
    itemsize = x.dtype.itemsize

    # Conv1 weight (out, in, 1, 1) -> (C_MID, C_IN), matching the feature dtype so the
    # MXU sees homogeneous operands (bf16 products are exact, accumulation is f32).
    w1_k = w1.reshape(C_MID, C_IN).astype(x.dtype)

    # Fold BatchNorm (inference) + the 1/HW pooling factor into conv2.
    scale = (gamma / jnp.sqrt(running_var + BN_EPS)).astype(jnp.float32)     # (C_MID,)
    shift = (beta - running_mean * scale).astype(jnp.float32)                # (C_MID,)
    w2_m = w2.reshape(C_OUT, C_MID).astype(jnp.float32)                      # (C_OUT, C_MID)

    w2_eff = jnp.zeros((C_MID, C_OUT_PAD), jnp.float32)
    w2_eff = w2_eff.at[:, :C_OUT].set(jnp.transpose(w2_m) * (scale / hw)[:, None])
    b2_eff = jnp.zeros((1, C_OUT_PAD), jnp.float32)
    b2_eff = b2_eff.at[0, :C_OUT].set(b2.astype(jnp.float32) + w2_m @ shift)

    feat_budget, vmem_limit, prefer_multi_step = _tpu_config()
    bt = _pick_block_b(B, hw, itemsize, feat_budget, prefer_multi_step)
    grid = (B // bt,)

    # Padding-aware VMEM accounting (keeps the explicit limit honest even for odd HW).
    hw_pad = _round_up(hw, 128)
    block_bytes = bt * C_IN * hw_pad * itemsize
    fixed_bytes = (2 * (C_MID * C_IN * itemsize + C_MID * C_OUT_PAD * 4 + C_OUT_PAD * 4)  # weights x2 bufs
                   + 2 * C_MID * hw_pad * 4                                               # f32 Swish temp
                   + bt * C_MID * 4 + 2 * bt * C_OUT_PAD * 4)                             # pooled + out
    if vmem_limit is not None:
        vmem_limit = int(max(vmem_limit, 2 * block_bytes + fixed_bytes + (8 << 20)))

    out_padded = pl.pallas_call(
        _predict_head_kernel,
        out_shape=jax.ShapeDtypeStruct((B, 1, C_OUT_PAD), jnp.float32),
        grid_spec=pltpu.PrefetchScalarGridSpec(
            num_scalar_prefetch=0,
            grid=grid,
            in_specs=[
                pl.BlockSpec((bt, C_IN, hw), lambda i: (i, 0, 0)),       # batch tile of features
                pl.BlockSpec((C_MID, C_IN), lambda i: (0, 0)),           # conv1 weight (resident)
                pl.BlockSpec((C_MID, C_OUT_PAD), lambda i: (0, 0)),      # folded conv2 weight
                pl.BlockSpec((1, C_OUT_PAD), lambda i: (0, 0)),          # folded conv2 bias
            ],
            out_specs=pl.BlockSpec((bt, 1, C_OUT_PAD), lambda i: (i, 0, 0)),
            scratch_shapes=[pltpu.VMEM((bt, C_MID), jnp.float32)],       # pooled rows
        ),
        compiler_params=pltpu.CompilerParams(
            dimension_semantics=("parallel",),
            vmem_limit_bytes=vmem_limit,
        ),
    )(x, w1_k, w2_eff, b2_eff)

    return out_padded[:, 0, :C_OUT].reshape(B, C_OUT, 1, 1)


def predict_head_reference(features, w1, gamma, beta, running_mean, running_var, w2, b2):
    """Pure-JAX reference (mirrors the PyTorch `predict` Sequential, eval-mode BN), f32."""
    x = features.astype(jnp.float32)
    w1m = w1.reshape(C_MID, C_IN).astype(jnp.float32)
    y = jnp.einsum('oc,bchw->bohw', w1m, x, precision=lax.Precision.HIGHEST)
    y = y * jax.nn.sigmoid(y)
    y = (y - running_mean[None, :, None, None]) / jnp.sqrt(running_var[None, :, None, None] + BN_EPS)
    y = y * gamma[None, :, None, None] + beta[None, :, None, None]
    pooled = jnp.mean(y, axis=(2, 3))                                         # (B, C_MID)
    out = jnp.einsum('bm,om->bo', pooled, w2.reshape(C_OUT, C_MID),
                     precision=lax.Precision.HIGHEST) + b2
    return out.reshape(-1, C_OUT, 1, 1)


if __name__ == "__main__":
    key = jax.random.PRNGKey(0)
    k_feat, k_w1, k_g, k_b, k_rm, k_rv, k_w2, k_b2 = jax.random.split(key, 8)

    B, H, W = 2, 4, 4   # small spatial extent for the synthetic backbone output

    # Synthetic backbone features (stand-in for the EfficientNet-B5 extractor output),
    # produced directly in bf16 as the backbone would on TPU.
    features = jax.random.normal(k_feat, (B, C_IN, H, W), jnp.float32).astype(jnp.bfloat16)

    # Deterministically initialized `predict` parameters (shapes match the PyTorch module).
    w1 = jax.random.normal(k_w1, (C_MID, C_IN, 1, 1), jnp.float32) * 0.02   # Conv2d(2048,128,1,1,bias=False)
    gamma = 1.0 + 0.1 * jax.random.normal(k_g, (C_MID,), jnp.float32)       # BatchNorm2d(128) weight
    beta = 0.1 * jax.random.normal(k_b, (C_MID,), jnp.float32)              # BatchNorm2d(128) bias
    running_mean = 0.1 * jax.random.normal(k_rm, (C_MID,), jnp.float32)
    running_var = jax.random.uniform(k_rv, (C_MID,), jnp.float32, 0.5, 1.5)
    w2 = jax.random.normal(k_w2, (C_OUT, C_MID, 1, 1), jnp.float32) * 0.1   # Conv2d(128,6,1,1,bias=True)
    b2 = 0.1 * jax.random.normal(k_b2, (C_OUT,), jnp.float32)

    out = predict_head_pallas(features, w1, gamma, beta, running_mean, running_var, w2, b2)
    out = jax.block_until_ready(out)

    # The kernel feeds the MXU bf16-rounded conv1 weights (exact products, f32 accumulation),
    # so compare against the reference evaluated with the same rounded weights.
    w1_check = w1.astype(jnp.bfloat16).astype(jnp.float32)
    ref = predict_head_reference(features, w1_check, gamma, beta,
                                 running_mean, running_var, w2, b2)
    ref = jax.block_until_ready(ref)

    assert out.shape == (B, C_OUT, 1, 1), out.shape
    assert jnp.allclose(out, ref, rtol=2e-3, atol=2e-3), (out.ravel(), ref.ravel())

    print("KERNEL_OK")
</pallas_src>

<mosaic_0001>
module attributes {stable_mosaic.version = 11 : i64} {
  func.func @_predict_head_kernel(%arg0: i32, %arg1: memref<2x2048x16xbf16, #tpu.memory_space<vmem>>, %arg2: memref<128x2048xbf16, #tpu.memory_space<vmem>>, %arg3: memref<128x128xf32, #tpu.memory_space<vmem>>, %arg4: memref<1x128xf32, #tpu.memory_space<vmem>>, %arg5: memref<2x1x128xf32, #tpu.memory_space<vmem>>, %arg6: memref<2x128xf32, #tpu.memory_space<vmem>>) attributes {dimension_semantics = [#tpu.dimension_semantics<parallel>], iteration_bounds = array<i64: 1>, scalar_prefetch = 0 : i64, scratch_operands = 1 : i64, tpu.core_type = #tpu.core_type<tc>, window_params = [{transform_indices = @transform_0, window_bounds = array<i64: 2, 2048, 16>}, {pipeline_mode = #tpu.pipeline_mode<synchronous>, transform_indices = @transform_1, window_bounds = array<i64: 128, 2048>}, {pipeline_mode = #tpu.pipeline_mode<synchronous>, transform_indices = @transform_2, window_bounds = array<i64: 128, 128>}, {pipeline_mode = #tpu.pipeline_mode<synchronous>, transform_indices = @transform_3, window_bounds = array<i64: 1, 128>}, {transform_indices = @transform_4, window_bounds = array<i64: 2, 1, 128>}]} {
    %c0 = arith.constant 0 : index
    %c0_0 = arith.constant 0 : index
    %0 = vector.load %arg2[%c0, %c0_0] : memref<128x2048xbf16, #tpu.memory_space<vmem>>, vector<128x2048xbf16>
    %c0_i32 = arith.constant 0 : i32
    %c2_i32 = arith.constant 2 : i32
    %1 = arith.addi %c0_i32, %c2_i32 : i32
    %c1_i32 = arith.constant 1 : i32
    scf.for %arg7 = %c0_i32 to %1 step %c1_i32  : i32 {
      %10 = arith.index_cast %arg7 : i32 to index
      %c0_11 = arith.constant 0 : index
      %c0_12 = arith.constant 0 : index
      %11 = vector.load %arg1[%10, %c0_11, %c0_12] : memref<2x2048x16xbf16, #tpu.memory_space<vmem>>, vector<1x2048x16xbf16>
      %12 = vector.shape_cast %11 : vector<1x2048x16xbf16> to vector<2048x16xbf16>
      %cst_13 = arith.constant dense<0.000000e+00> : vector<128x16xf32>
      %13 = tpu.matmul %0, %12, %cst_13 {dimension_numbers = #tpu.dot_dimension_numbers<[1], [0], [0], [1], [0, 0, 1, 1], [], []>} : vector<128x2048xbf16>, vector<2048x16xbf16>, vector<128x16xf32> -> vector<128x16xf32>
      %14 = arith.negf %13 : vector<128x16xf32>
      %15 = math.exp %14 : vector<128x16xf32>
      %cst_14 = arith.constant 1.000000e+00 : f32
      %16 = vector.broadcast %cst_14 : f32 to vector<128x16xf32>
      %17 = arith.addf %16, %15 : vector<128x16xf32>
      %18 = arith.divf %16, %17 : vector<128x16xf32>
      %19 = arith.mulf %13, %18 : vector<128x16xf32>
      %cst_15 = arith.constant dense<0.000000e+00> : vector<128xf32>
      %20 = vector.multi_reduction <add>, %19, %cst_15 [1] : vector<128x16xf32> to vector<128xf32>
      %21 = arith.index_cast %arg7 : i32 to index
      %c0_16 = arith.constant 0 : index
      %22 = vector.load %arg6[%21, %c0_16] : memref<2x128xf32, #tpu.memory_space<vmem>>, vector<1x128xf32>
      %23 = vector.shape_cast %22 : vector<1x128xf32> to vector<128xf32>
      %24 = vector.shape_cast %20 : vector<128xf32> to vector<1x128xf32>
      tpu.vector_store %arg6[%21, %c0_16], %24 {strides = array<i32>} : memref<2x128xf32, #tpu.memory_space<vmem>>, vector<1x128xf32>,
    }
    %c2_i32_1 = arith.constant 2 : i32
    %c0_2 = arith.constant 0 : index
    %c0_3 = arith.constant 0 : index
    %2 = vector.load %arg6[%c0_2, %c0_3] : memref<2x128xf32, #tpu.memory_space<vmem>>, vector<2x128xf32>
    %c0_4 = arith.constant 0 : index
    %c0_5 = arith.constant 0 : index
    %3 = vector.load %arg3[%c0_4, %c0_5] : memref<128x128xf32, #tpu.memory_space<vmem>>, vector<128x128xf32>
    %cst = arith.constant dense<0.000000e+00> : vector<2x128xf32>
    %4 = tpu.matmul %2, %3, %cst {dimension_numbers = #tpu.dot_dimension_numbers<[1], [0], [0], [1], [0, 0, 1, 1], [], []>} : vector<2x128xf32>, vector<128x128xf32>, vector<2x128xf32> -> vector<2x128xf32>
    %c0_6 = arith.constant 0 : index
    %c0_7 = arith.constant 0 : index
    %5 = vector.load %arg4[%c0_6, %c0_7] : memref<1x128xf32, #tpu.memory_space<vmem>>, vector<1x128xf32>
    %6 = vector.broadcast %5 : vector<1x128xf32> to vector<2x128xf32>
    %7 = arith.addf %4, %6 : vector<2x128xf32>
    %8 = vector.shape_cast %7 : vector<2x128xf32> to vector<2x1x128xf32>
    %c0_8 = arith.constant 0 : index
    %c0_9 = arith.constant 0 : index
    %c0_10 = arith.constant 0 : index
    %9 = vector.load %arg5[%c0_8, %c0_9, %c0_10] : memref<2x1x128xf32, #tpu.memory_space<vmem>>, vector<2x1x128xf32>
    tpu.vector_store %arg5[%c0_8, %c0_9, %c0_10], %8 {strides = array<i32>} : memref<2x1x128xf32, #tpu.memory_space<vmem>>, vector<2x1x128xf32>,
    return
  }
  func.func @transform_0(%arg0: i32) -> (i32, i32, i32) {
    %c0_i32 = arith.constant 0 : i32
    %c0_i32_0 = arith.constant 0 : i32
    %c0_i32_1 = arith.constant 0 : i32
    return %arg0, %c0_i32, %c0_i32_0 : i32, i32, i32
  }
  func.func @transform_1(%arg0: i32) -> (i32, i32) {
    %c0_i32 = arith.constant 0 : i32
    %c0_i32_0 = arith.constant 0 : i32
    %c0_i32_1 = arith.constant 0 : i32
    return %c0_i32, %c0_i32_0 : i32, i32
  }
  func.func @transform_2(%arg0: i32) -> (i32, i32) {
    %c0_i32 = arith.constant 0 : i32
    %c0_i32_0 = arith.constant 0 : i32
    %c0_i32_1 = arith.constant 0 : i32
    return %c0_i32, %c0_i32_0 : i32, i32
  }
  func.func @transform_3(%arg0: i32) -> (i32, i32) {
    %c0_i32 = arith.constant 0 : i32
    %c0_i32_0 = arith.constant 0 : i32
    %c0_i32_1 = arith.constant 0 : i32
    return %c0_i32, %c0_i32_0 : i32, i32
  }
  func.func @transform_4(%arg0: i32) -> (i32, i32, i32) {
    %c0_i32 = arith.constant 0 : i32
    %c0_i32_0 = arith.constant 0 : i32
    %c0_i32_1 = arith.constant 0 : i32
    return %arg0, %c0_i32, %c0_i32_0 : i32, i32, i32
  }
}

</mosaic_0001>

<bundles_post_ra>
// kernel: predict_head_pallas.1
= control target key start
LH: loop header
LB: loop body
LE: loop exit
PB: predicated region body
PF: predicated region fallthrough
CT: control target
= control target key end

     0   :  { %s4740_s11 = smov 0   ;;  %s5569_s0 = inlined_call_operand.vmem [shape: bf16[2,2048,16], index: 0, kind: input, shape index: {}]   ;;  %s5570_s1 = inlined_call_operand.vmem [shape: bf16[128,2048], index: 1, kind: input, shape index: {}]   ;;  %s5571_s2 = inlined_call_operand.vmem [shape: f32[128,128], index: 2, kind: input, shape index: {}]   ;;  %s5572_s3 = inlined_call_operand.vmem [shape: f32[1,128], index: 3, kind: input, shape index: {}]   ;;  %s5573_s4 = inlined_call_operand.vmem [shape: f32[2,1,128], index: 4, kind: output, shape index: {}]  }
   0x1   :  { %v4103_v0 = vld [vmem:[%s5570_s1] sm:$0xff]  ;;  %v4108_v1 = vld [vmem:[%s5570_s1 + $0x8] sm:$0xff]  ;;  %v4113_v2 = vld [vmem:[%s5570_s1 + $0x10] sm:$0xff] }
   0x2   :  { %5775 = vst [vmem:[#allocation3_spill] sm:$0xff] %v4103_v0  ;;  %5776 = vst [vmem:[#allocation4_spill] sm:$0xff] %v4108_v1  ;;  %v4118_v3 = vld [vmem:[%s5570_s1 + $0x18] sm:$0xff]  ;;  %v4123_v4 = vld [vmem:[%s5570_s1 + $0x20] sm:$0xff] }
   0x3   :  { %5777 = vst [vmem:[#allocation5_spill] sm:$0xff] %v4113_v2  ;;  %5778 = vst [vmem:[#allocation6_spill] sm:$0xff] %v4118_v3  ;;  %v4128_v5 = vld [vmem:[%s5570_s1 + $0x28] sm:$0xff]  ;;  %v4133_v6 = vld [vmem:[%s5570_s1 + $0x30] sm:$0xff] }
   0x4   :  { %5779 = vst [vmem:[#allocation7_spill] sm:$0xff] %v4123_v4  ;;  %5780 = vst [vmem:[#allocation8_spill] sm:$0xff] %v4128_v5  ;;  %v4138_v7 = vld [vmem:[%s5570_s1 + $0x38] sm:$0xff]  ;;  %v4143_v8 = vld [vmem:[%s5570_s1 + $0x40] sm:$0xff] }
   0x5   :  { %5781 = vst [vmem:[#allocation9_spill] sm:$0xff] %v4133_v6  ;;  %5782 = vst [vmem:[#allocation10_spill] sm:$0xff] %v4138_v7  ;;  %v4148_v9 = vld [vmem:[%s5570_s1 + $0x48] sm:$0xff]  ;;  %v4153_v10 = vld [vmem:[%s5570_s1 + $0x50] sm:$0xff] }
   0x6   :  { %5783 = vst [vmem:[#allocation11_spill] sm:$0xff] %v4143_v8  ;;  %5784 = vst [vmem:[#allocation12_spill] sm:$0xff] %v4148_v9  ;;  %v4158_v11 = vld [vmem:[%s5570_s1 + $0x58] sm:$0xff]  ;;  %v4163_v12 = vld [vmem:[%s5570_s1 + $0x60] sm:$0xff] }
   0x7   :  { %5785 = vst [vmem:[#allocation13_spill] sm:$0xff] %v4153_v10  ;;  %5786 = vst [vmem:[#allocation14_spill] sm:$0xff] %v4158_v11  ;;  %v4168_v13 = vld [vmem:[%s5570_s1 + $0x68] sm:$0xff]  ;;  %v4173_v14 = vld [vmem:[%s5570_s1 + $0x70] sm:$0xff] }
   0x8   :  { %5787 = vst [vmem:[#allocation15_spill] sm:$0xff] %v4163_v12  ;;  %5788 = vst [vmem:[#allocation16_spill] sm:$0xff] %v4168_v13  ;;  %v4178_v15 = vld [vmem:[%s5570_s1 + $0x78] sm:$0xff]  ;;  %v4183_v16 = vld [vmem:[%s5570_s1 + $0x80] sm:$0xff] }
   0x9   :  { %5789 = vst [vmem:[#allocation17_spill] sm:$0xff] %v4173_v14  ;;  %5790 = vst [vmem:[#allocation18_spill] sm:$0xff] %v4178_v15  ;;  %v4188_v17 = vld [vmem:[%s5570_s1 + $0x88] sm:$0xff]  ;;  %v4193_v18 = vld [vmem:[%s5570_s1 + $0x90] sm:$0xff] }
   0xa   :  { %5791 = vst [vmem:[#allocation19_spill] sm:$0xff] %v4183_v16  ;;  %5792 = vst [vmem:[#allocation20_spill] sm:$0xff] %v4188_v17  ;;  %v4198_v19 = vld [vmem:[%s5570_s1 + $0x98] sm:$0xff]  ;;  %v4203_v20 = vld [vmem:[%s5570_s1 + $0xa0] sm:$0xff] }
   0xb   :  { %5793 = vst [vmem:[#allocation21_spill] sm:$0xff] %v4193_v18  ;;  %5794 = vst [vmem:[#allocation22_spill] sm:$0xff] %v4198_v19  ;;  %v4208_v21 = vld [vmem:[%s5570_s1 + $0xa8] sm:$0xff]  ;;  %v4213_v22 = vld [vmem:[%s5570_s1 + $0xb0] sm:$0xff] }
   0xc   :  { %5795 = vst [vmem:[#allocation23_spill] sm:$0xff] %v4203_v20  ;;  %5796 = vst [vmem:[#allocation24_spill] sm:$0xff] %v4208_v21  ;;  %v4218_v23 = vld [vmem:[%s5570_s1 + $0xb8] sm:$0xff]  ;;  %v4223_v24 = vld [vmem:[%s5570_s1 + $0xc0] sm:$0xff] }
   0xd   :  { %5797 = vst [vmem:[#allocation25_spill] sm:$0xff] %v4213_v22  ;;  %5798 = vst [vmem:[#allocation26_spill] sm:$0xff] %v4218_v23  ;;  %v4228_v25 = vld [vmem:[%s5570_s1 + $0xc8] sm:$0xff]  ;;  %v4233_v26 = vld [vmem:[%s5570_s1 + $0xd0] sm:$0xff] }
   0xe   :  { %5799 = vst [vmem:[#allocation27_spill] sm:$0xff] %v4223_v24  ;;  %5800 = vst [vmem:[#allocation28_spill] sm:$0xff] %v4228_v25  ;;  %v4238_v27 = vld [vmem:[%s5570_s1 + $0xd8] sm:$0xff]  ;;  %v4243_v28 = vld [vmem:[%s5570_s1 + $0xe0] sm:$0xff] }
   0xf   :  { %5801 = vst [vmem:[#allocation29_spill] sm:$0xff] %v4233_v26  ;;  %5802 = vst [vmem:[#allocation30_spill] sm:$0xff] %v4238_v27  ;;  %v4248_v29 = vld [vmem:[%s5570_s1 + $0xe8] sm:$0xff]  ;;  %v4253_v30 = vld [vmem:[%s5570_s1 + $0xf0] sm:$0xff] }
  0x10   :  { %5803 = vst [vmem:[#allocation31_spill] sm:$0xff] %v4243_v28  ;;  %5804 = vst [vmem:[#allocation32_spill] sm:$0xff] %v4248_v29  ;;  %v4258_v31 = vld [vmem:[%s5570_s1 + $0xf8] sm:$0xff]  ;;  %v4263_v32 = vld [vmem:[%s5570_s1 + $0x100] sm:$0xff] }
  0x11   :  { %5805 = vst [vmem:[#allocation33_spill] sm:$0xff] %v4253_v30  ;;  %5806 = vst [vmem:[#allocation34_spill] sm:$0xff] %v4258_v31  ;;  %v4268_v33 = vld [vmem:[%s5570_s1 + $0x108] sm:$0xff]  ;;  %v4273_v34 = vld [vmem:[%s5570_s1 + $0x110] sm:$0xff] }
  0x12   :  { %5807 = vst [vmem:[#allocation35_spill] sm:$0xff] %v4263_v32  ;;  %5808 = vst [vmem:[#allocation36_spill] sm:$0xff] %v4268_v33  ;;  %v4278_v35 = vld [vmem:[%s5570_s1 + $0x118] sm:$0xff]  ;;  %v4283_v36 = vld [vmem:[%s5570_s1 + $0x120] sm:$0xff] }
  0x13   :  { %5809 = vst [vmem:[#allocation37_spill] sm:$0xff] %v4273_v34  ;;  %5810 = vst [vmem:[#allocation38_spill] sm:$0xff] %v4278_v35  ;;  %v4288_v37 = vld [vmem:[%s5570_s1 + $0x128] sm:$0xff]  ;;  %v4293_v38 = vld [vmem:[%s5570_s1 + $0x130] sm:$0xff] }
  0x14   :  { %5811 = vst [vmem:[#allocation39_spill] sm:$0xff] %v4283_v36  ;;  %5812 = vst [vmem:[#allocation40_spill] sm:$0xff] %v4288_v37  ;;  %v4298_v39 = vld [vmem:[%s5570_s1 + $0x138] sm:$0xff]  ;;  %v4303_v40 = vld [vmem:[%s5570_s1 + $0x140] sm:$0xff] }
  0x15   :  { %5813 = vst [vmem:[#allocation41_spill] sm:$0xff] %v4293_v38  ;;  %5814 = vst [vmem:[#allocation42_spill] sm:$0xff] %v4298_v39  ;;  %v4308_v41 = vld [vmem:[%s5570_s1 + $0x148] sm:$0xff]  ;;  %v4313_v42 = vld [vmem:[%s5570_s1 + $0x150] sm:$0xff] }
  0x16   :  { %5815 = vst [vmem:[#allocation43_spill] sm:$0xff] %v4303_v40  ;;  %5816 = vst [vmem:[#allocation44_spill] sm:$0xff] %v4308_v41  ;;  %v4318_v43 = vld [vmem:[%s5570_s1 + $0x158] sm:$0xff]  ;;  %v4323_v44 = vld [vmem:[%s5570_s1 + $0x160] sm:$0xff] }
  0x17   :  { %5817 = vst [vmem:[#allocation45_spill] sm:$0xff] %v4313_v42  ;;  %5818 = vst [vmem:[#allocation46_spill] sm:$0xff] %v4318_v43  ;;  %v4328_v45 = vld [vmem:[%s5570_s1 + $0x168] sm:$0xff]  ;;  %v4333_v46 = vld [vmem:[%s5570_s1 + $0x170] sm:$0xff] }
  0x18   :  { %5819 = vst [vmem:[#allocation47_spill] sm:$0xff] %v4323_v44  ;;  %5820 = vst [vmem:[#allocation48_spill] sm:$0xff] %v4328_v45  ;;  %v4338_v47 = vld [vmem:[%s5570_s1 + $0x178] sm:$0xff]  ;;  %v4343_v48 = vld [vmem:[%s5570_s1 + $0x180] sm:$0xff] }
  0x19   :  { %5821 = vst [vmem:[#allocation49_spill] sm:$0xff] %v4333_v46  ;;  %5822 = vst [vmem:[#allocation50_spill] sm:$0xff] %v4338_v47  ;;  %v4348_v49 = vld [vmem:[%s5570_s1 + $0x188] sm:$0xff]  ;;  %v4353_v50 = vld [vmem:[%s5570_s1 + $0x190] sm:$0xff] }
  0x1a   :  { %5823 = vst [vmem:[#allocation51_spill] sm:$0xff] %v4343_v48  ;;  %5824 = vst [vmem:[#allocation52_spill] sm:$0xff] %v4348_v49  ;;  %v4358_v51 = vld [vmem:[%s5570_s1 + $0x198] sm:$0xff]  ;;  %v4363_v52 = vld [vmem:[%s5570_s1 + $0x1a0] sm:$0xff] }
  0x1b   :  { %5825 = vst [vmem:[#allocation53_spill] sm:$0xff] %v4353_v50  ;;  %5826 = vst [vmem:[#allocation54_spill] sm:$0xff] %v4358_v51  ;;  %v4368_v53 = vld [vmem:[%s5570_s1 + $0x1a8] sm:$0xff]  ;;  %v4373_v54 = vld [vmem:[%s5570_s1 + $0x1b0] sm:$0xff] }
  0x1c   :  { %5827 = vst [vmem:[#allocation55_spill] sm:$0xff] %v4363_v52  ;;  %5828 = vst [vmem:[#allocation56_spill] sm:$0xff] %v4368_v53  ;;  %v4378_v55 = vld [vmem:[%s5570_s1 + $0x1b8] sm:$0xff]  ;;  %v4383_v56 = vld [vmem:[%s5570_s1 + $0x1c0] sm:$0xff] }
  0x1d   :  { %5829 = vst [vmem:[#allocation57_spill] sm:$0xff] %v4373_v54  ;;  %5830 = vst [vmem:[#allocation58_spill] sm:$0xff] %v4378_v55  ;;  %v4388_v57 = vld [vmem:[%s5570_s1 + $0x1c8] sm:$0xff]  ;;  %v4393_v58 = vld [vmem:[%s5570_s1 + $0x1d0] sm:$0xff] }
  0x1e   :  { %5831 = vst [vmem:[#allocation59_spill] sm:$0xff] %v4383_v56  ;;  %5832 = vst [vmem:[#allocation60_spill] sm:$0xff] %v4388_v57  ;;  %v4398_v59 = vld [vmem:[%s5570_s1 + $0x1d8] sm:$0xff]  ;;  %v4403_v60 = vld [vmem:[%s5570_s1 + $0x1e0] sm:$0xff] }
  0x1f   :  { %5833 = vst [vmem:[#allocation61_spill] sm:$0xff] %v4393_v58  ;;  %5834 = vst [vmem:[#allocation62_spill] sm:$0xff] %v4398_v59  ;;  %v4408_v61 = vld [vmem:[%s5570_s1 + $0x1e8] sm:$0xff]  ;;  %v4413_v62 = vld [vmem:[%s5570_s1 + $0x1f0] sm:$0xff] }
  0x20   :  { %5835 = vst [vmem:[#allocation63_spill] sm:$0xff] %v4403_v60  ;;  %5836 = vst [vmem:[#allocation64_spill] sm:$0xff] %v4408_v61  ;;  %v4418_v63 = vld [vmem:[%s5570_s1 + $0x1f8] sm:$0xff]  ;;  %v4423_v55 = vld [vmem:[%s5570_s1 + $0x200] sm:$0xff] }
  0x21   :  { %5837 = vst [vmem:[#allocation65_spill] sm:$0xff] %v4413_v62  ;;  %5838 = vst [vmem:[#allocation66_spill] sm:$0xff] %v4418_v63  ;;  %v4428_v54 = vld [vmem:[%s5570_s1 + $0x208] sm:$0xff]  ;;  %v4433_v39 = vld [vmem:[%s5570_s1 + $0x210] sm:$0xff] }
  0x22   :  { %5839 = vst [vmem:[#allocation67_spill] sm:$0xff] %v4423_v55  ;;  %5840 = vst [vmem:[#allocation68_spill] sm:$0xff] %v4428_v54  ;;  %v4438_v62 = vld [vmem:[%s5570_s1 + $0x218] sm:$0xff]  ;;  %v4443_v63 = vld [vmem:[%s5570_s1 + $0x220] sm:$0xff] }
  0x23   :  { %5841 = vst [vmem:[#allocation69_spill] sm:$0xff] %v4433_v39  ;;  %5842 = vst [vmem:[#allocation70_spill] sm:$0xff] %v4438_v62  ;;  %v4448_v47 = vld [vmem:[%s5570_s1 + $0x228] sm:$0xff]  ;;  %v4453_v38 = vld [vmem:[%s5570_s1 + $0x230] sm:$0xff] }
  0x24   :  { %5843 = vst [vmem:[#allocation71_spill] sm:$0xff] %v4443_v63  ;;  %5844 = vst [vmem:[#allocation72_spill] sm:$0xff] %v4448_v47  ;;  %v4458_v46 = vld [vmem:[%s5570_s1 + $0x238] sm:$0xff]  ;;  %v4463_v23 = vld [vmem:[%s5570_s1 + $0x240] sm:$0xff] }
  0x25   :  { %5845 = vst [vmem:[#allocation73_spill] sm:$0xff] %v4453_v38  ;;  %5846 = vst [vmem:[#allocation74_spill] sm:$0xff] %v4458_v46  ;;  %v4468_v31 = vld [vmem:[%s5570_s1 + $0x248] sm:$0xff]  ;;  %v4473_v22 = vld [vmem:[%s5570_s1 + $0x250] sm:$0xff] }
  0x26   :  { %5847 = vst [vmem:[#allocation75_spill] sm:$0xff] %v4463_v23  ;;  %5848 = vst [vmem:[#allocation76_spill] sm:$0xff] %v4468_v31  ;;  %v4478_v38 = vld [vmem:[%s5570_s1 + $0x258] sm:$0xff]  ;;  %v4483_v46 = vld [vmem:[%s5570_s1 + $0x260] sm:$0xff] }
  0x27   :  { %5849 = vst [vmem:[#allocation77_spill] sm:$0xff] %v4473_v22  ;;  %5850 = vst [vmem:[#allocation78_spill] sm:$0xff] %v4478_v38  ;;  %v4488_v30 = vld [vmem:[%s5570_s1 + $0x268] sm:$0xff]  ;;  %v4493_v7 = vld [vmem:[%s5570_s1 + $0x270] sm:$0xff] }
  0x28   :  { %5851 = vst [vmem:[#allocation79_spill] sm:$0xff] %v4483_v46  ;;  %5852 = vst [vmem:[#allocation80_spill] sm:$0xff] %v4488_v30  ;;  %v4498_v15 = vld [vmem:[%s5570_s1 + $0x278] sm:$0xff]  ;;  %v4503_v6 = vld [vmem:[%s5570_s1 + $0x280] sm:$0xff] }
  0x29   :  { %5853 = vst [vmem:[#allocation81_spill] sm:$0xff] %v4493_v7  ;;  %5854 = vst [vmem:[#allocation82_spill] sm:$0xff] %v4498_v15  ;;  %v4508_v14 = vld [vmem:[%s5570_s1 + $0x288] sm:$0xff]  ;;  %v4513_v47 = vld [vmem:[%s5570_s1 + $0x290] sm:$0xff] }
  0x2a   :  { %5855 = vst [vmem:[#allocation83_spill] sm:$0xff] %v4503_v6  ;;  %5856 = vst [vmem:[#allocation84_spill] sm:$0xff] %v4508_v14  ;;  %v4518_v7 = vld [vmem:[%s5570_s1 + $0x298] sm:$0xff]  ;;  %v4523_v15 = vld [vmem:[%s5570_s1 + $0x2a0] sm:$0xff] }
  0x2b   :  { %5857 = vst [vmem:[#allocation85_spill] sm:$0xff] %v4513_v47  ;;  %5858 = vst [vmem:[#allocation86_spill] sm:$0xff] %v4518_v7  ;;  %v4528_v30 = vld [vmem:[%s5570_s1 + $0x2a8] sm:$0xff]  ;;  %v4533_v63 = vld [vmem:[%s5570_s1 + $0x2b0] sm:$0xff] }
  0x2c   :  { %5859 = vst [vmem:[#allocation87_spill] sm:$0xff] %v4523_v15  ;;  %5860 = vst [vmem:[#allocation88_spill] sm:$0xff] %v4528_v30  ;;  %v4538_v46 = vld [vmem:[%s5570_s1 + $0x2b8] sm:$0xff]  ;;  %v4543_v53 = vld [vmem:[%s5570_s1 + $0x2c0] sm:$0xff] }
  0x2d   :  { %5861 = vst [vmem:[#allocation89_spill] sm:$0xff] %v4533_v63  ;;  %5862 = vst [vmem:[#allocation90_spill] sm:$0xff] %v4538_v46  ;;  %v4548_v15 = vld [vmem:[%s5570_s1 + $0x2c8] sm:$0xff]  ;;  %v4553_v30 = vld [vmem:[%s5570_s1 + $0x2d0] sm:$0xff] }
  0x2e   :  { %5863 = vst [vmem:[#allocation91_spill] sm:$0xff] %v4543_v53  ;;  %5864 = vst [vmem:[#allocation92_spill] sm:$0xff] %v4548_v15  ;;  %v4558_v63 = vld [vmem:[%s5570_s1 + $0x2d8] sm:$0xff]  ;;  %v4563_v46 = vld [vmem:[%s5570_s1 + $0x2e0] sm:$0xff] }
  0x2f   :  { %5865 = vst [vmem:[#allocation93_spill] sm:$0xff] %v4553_v30  ;;  %5866 = vst [vmem:[#allocation94_spill] sm:$0xff] %v4558_v63  ;;  %v4568_v61 = vld [vmem:[%s5570_s1 + $0x2e8] sm:$0xff]  ;;  %v4573_v52 = vld [vmem:[%s5570_s1 + $0x2f0] sm:$0xff] }
  0x30   :  { %5867 = vst [vmem:[#allocation95_spill] sm:$0xff] %v4563_v46  ;;  %5868 = vst [vmem:[#allocation96_spill] sm:$0xff] %v4568_v61  ;;  %v4578_v60 = vld [vmem:[%s5570_s1 + $0x2f8] sm:$0xff]  ;;  %v4583_v37 = vld [vmem:[%s5570_s1 + $0x300] sm:$0xff] }
  0x31   :  { %5869 = vst [vmem:[#allocation97_spill] sm:$0xff] %v4573_v52  ;;  %5870 = vst [vmem:[#allocation98_spill] sm:$0xff] %v4578_v60  ;;  %v4588_v46 = vld [vmem:[%s5570_s1 + $0x308] sm:$0xff]  ;;  %v4593_v61 = vld [vmem:[%s5570_s1 + $0x310] sm:$0xff] }
  0x32   :  { %5871 = vst [vmem:[#allocation99_spill] sm:$0xff] %v4583_v37  ;;  %5872 = vst [vmem:[#allocation100_spill] sm:$0xff] %v4588_v46  ;;  %v4598_v52 = vld [vmem:[%s5570_s1 + $0x318] sm:$0xff]  ;;  %v4603_v60 = vld [vmem:[%s5570_s1 + $0x320] sm:$0xff] }
  0x33   :  { %5873 = vst [vmem:[#allocation101_spill] sm:$0xff] %v4593_v61  ;;  %5874 = vst [vmem:[#allocation102_spill] sm:$0xff] %v4598_v52  ;;  %v4608_v45 = vld [vmem:[%s5570_s1 + $0x328] sm:$0xff]  ;;  %v4613_v36 = vld [vmem:[%s5570_s1 + $0x330] sm:$0xff] }
  0x34   :  { %5875 = vst [vmem:[#allocation103_spill] sm:$0xff] %v4603_v60  ;;  %5876 = vst [vmem:[#allocation104_spill] sm:$0xff] %v4608_v45  ;;  %v4618_v44 = vld [vmem:[%s5570_s1 + $0x338] sm:$0xff]  ;;  %v4623_v21 = vld [vmem:[%s5570_s1 + $0x340] sm:$0xff] }
  0x35   :  { %5877 = vst [vmem:[#allocation105_spill] sm:$0xff] %v4613_v36  ;;  %5878 = vst [vmem:[#allocation106_spill] sm:$0xff] %v4618_v44  ;;  %v4628_v60 = vld [vmem:[%s5570_s1 + $0x348] sm:$0xff]  ;;  %v4633_v45 = vld [vmem:[%s5570_s1 + $0x350] sm:$0xff] }
  0x36   :  { %5879 = vst [vmem:[#allocation107_spill] sm:$0xff] %v4623_v21  ;;  %5880 = vst [vmem:[#allocation108_spill] sm:$0xff] %v4628_v60  ;;  %v4638_v36 = vld [vmem:[%s5570_s1 + $0x358] sm:$0xff]  ;;  %v4643_v44 = vld [vmem:[%s5570_s1 + $0x360] sm:$0xff] }
  0x37   :  { %5881 = vst [vmem:[#allocation109_spill] sm:$0xff] %v4633_v45  ;;  %5882 = vst [vmem:[#allocation110_spill] sm:$0xff] %v4638_v36  ;;  %v4648_v29 = vld [vmem:[%s5570_s1 + $0x368] sm:$0xff]  ;;  %v4653_v20 = vld [vmem:[%s5570_s1 + $0x370] sm:$0xff] }
  0x38   :  { %5883 = vst [vmem:[#allocation111_spill] sm:$0xff] %v4643_v44  ;;  %5884 = vst [vmem:[#allocation112_spill] sm:$0xff] %v4648_v29  ;;  %v4658_v28 = vld [vmem:[%s5570_s1 + $0x378] sm:$0xff]  ;;  %v4663_v5 = vld [vmem:[%s5570_s1 + $0x380] sm:$0xff] }
  0x39   :  { %5885 = vst [vmem:[#allocation113_spill] sm:$0xff] %v4653_v20  ;;  %5886 = vst [vmem:[#allocation114_spill] sm:$0xff] %v4658_v28  ;;  %v4668_v44 = vld [vmem:[%s5570_s1 + $0x388] sm:$0xff]  ;;  %v4673_v29 = vld [vmem:[%s5570_s1 + $0x390] sm:$0xff] }
  0x3a   :  { %5887 = vst [vmem:[#allocation115_spill] sm:$0xff] %v4663_v5  ;;  %5888 = vst [vmem:[#allocation116_spill] sm:$0xff] %v4668_v44  ;;  %v4678_v20 = vld [vmem:[%s5570_s1 + $0x398] sm:$0xff]  ;;  %v4683_v28 = vld [vmem:[%s5570_s1 + $0x3a0] sm:$0xff] }
  0x3b   :  { %5889 = vst [vmem:[#allocation117_spill] sm:$0xff] %v4673_v29  ;;  %5890 = vst [vmem:[#allocation118_spill] sm:$0xff] %v4678_v20  ;;  %v4688_v13 = vld [vmem:[%s5570_s1 + $0x3a8] sm:$0xff]  ;;  %v4693_v4 = vld [vmem:[%s5570_s1 + $0x3b0] sm:$0xff] }
  0x3c   :  { %5891 = vst [vmem:[#allocation119_spill] sm:$0xff] %v4683_v28  ;;  %5892 = vst [vmem:[#allocation120_spill] sm:$0xff] %v4688_v13  ;;  %v4698_v12 = vld [vmem:[%s5570_s1 + $0x3b8] sm:$0xff]  ;;  %v4703_v20 = vld [vmem:[%s5570_s1 + $0x3c0] sm:$0xff] }
  0x3d   :  { %5893 = vst [vmem:[#allocation121_spill] sm:$0xff] %v4693_v4  ;;  %5894 = vst [vmem:[#allocation122_spill] sm:$0xff] %v4698_v12  ;;  %v4708_v28 = vld [vmem:[%s5570_s1 + $0x3c8] sm:$0xff]  ;;  %v4713_v13 = vld [vmem:[%s5570_s1 + $0x3d0] sm:$0xff] }
  0x3e   :  { %5895 = vst [vmem:[#allocation123_spill] sm:$0xff] %v4703_v20  ;;  %5896 = vst [vmem:[#allocation124_spill] sm:$0xff] %v4708_v28  ;;  %v4718_v4 = vld [vmem:[%s5570_s1 + $0x3d8] sm:$0xff]  ;;  %v4723_v12 = vld [vmem:[%s5570_s1 + $0x3e0] sm:$0xff] }
  0x3f   :  { %5897 = vst [vmem:[#allocation125_spill] sm:$0xff] %v4713_v13  ;;  %5898 = vst [vmem:[#allocation126_spill] sm:$0xff] %v4718_v4  ;;  %v4728_v29 = vld [vmem:[%s5570_s1 + $0x3e8] sm:$0xff]  ;;  %v4733_v52 = vld [vmem:[%s5570_s1 + $0x3f0] sm:$0xff] }
  0x40   :  { %5899 = vst [vmem:[#allocation127_spill] sm:$0xff] %v4723_v12  ;;  %5900 = vst [vmem:[#allocation128_spill] sm:$0xff] %v4728_v29  ;;  %v4738_v13 = vld [vmem:[%s5570_s1 + $0x3f8] sm:$0xff] }
  0x41   :  { %5901 = vst [vmem:[#allocation129_spill] sm:$0xff] %v4733_v52  ;;  %5902 = vst [vmem:[#allocation130_spill] sm:$0xff] %v4738_v13 }
  0x42 LB: > { %v5903_v63 = vld [vmem:[#allocation94_spill] sm:$0xff]  ;;  %v5905_v60 = vld [vmem:[#allocation108_spill] sm:$0xff]  ;;  %v5907_v58 = vld [vmem:[#allocation61_spill] sm:$0xff]  ;;  %s3296_s12 = sshll.u32 %s4070_s11, 10  ;;  %vm2707_vm0 = vcmask 130048   ;;  %vm2783_vm1 = vcmask 130112   ;;  %s4070_s11 = sphi %s4740_s11, %s151_s11  }
  0x43   : > { %v5904_v62 = vld [vmem:[#allocation70_spill] sm:$0xff]  ;;  %v5908_v57 = vld [vmem:[#allocation60_spill] sm:$0xff]  ;;  %v5909_v56 = vld [vmem:[#allocation59_spill] sm:$0xff]  ;;  %s4753_s14 = scalar_lea.vmem %s5569_s0, %s3296_s12  ;;  %vm2790_vm2 = vcmask 195712   ;;  %vm2797_vm3 = vcmask 261312   ;;  %vm2804_vm4 = vcmask 326912  }
  0x44   : > { %v5906_v59 = vld [vmem:[#allocation62_spill] sm:$0xff]  ;;  %v5910_v55 = vld [vmem:[#allocation67_spill] sm:$0xff]  ;;  %v5911_v54 = vld [vmem:[#allocation68_spill] sm:$0xff]  ;;  %vm2811_vm5 = vcmask 392512   ;;  %vm2818_vm6 = vcmask 458112   ;;  %vm2825_vm7 = vcmask 523712  }
  0x45   : > { %v5912_v53 = vld [vmem:[#allocation91_spill] sm:$0xff]  ;;  %v5913_v51 = vld [vmem:[#allocation54_spill] sm:$0xff]  ;;  %v5914_v50 = vld [vmem:[#allocation53_spill] sm:$0xff]  ;;  %vm2832_vm8 = vcmask 589312   ;;  %vm2839_vm9 = vcmask 654912   ;;  %vm2846_vm10 = vcmask 720512  }
  0x46   : > { %v5915_v49 = vld [vmem:[#allocation52_spill] sm:$0xff]  ;;  %v5916_v48 = vld [vmem:[#allocation51_spill] sm:$0xff]  ;;  %v5917_v47 = vld [vmem:[#allocation85_spill] sm:$0xff]  ;;  %vm2853_vm11 = vcmask 786112   ;;  %vm2860_vm12 = vcmask 851712   ;;  %vm2867_vm13 = vcmask 917312  }
  0x47   : > { %v5918_v46 = vld [vmem:[#allocation100_spill] sm:$0xff]  ;;  %v5920_v43 = vld [vmem:[#allocation46_spill] sm:$0xff]  ;;  %v5921_v42 = vld [vmem:[#allocation45_spill] sm:$0xff]  ;;  %vm2874_vm14 = vcmask 982912   ;;  %vm2881_vm15 = vcmask 1048512   ;;  %s2884_s15 = scalar_lea.vmem [#allocation2], %s4070_s11 }
  0x48   : > { %v5919_v44 = vld [vmem:[#allocation116_spill] sm:$0xff]  ;;  %v5923_v40 = vld [vmem:[#allocation43_spill] sm:$0xff]  ;;  %v5924_v39 = vld [vmem:[#allocation69_spill] sm:$0xff]  ;;  %s151_s11 = sadd.s32 1, %s4070_s11  }
  0x49   : > { %v5922_v41 = vld [vmem:[#allocation44_spill] sm:$0xff]  ;;  %v5925_v38 = vld [vmem:[#allocation78_spill] sm:$0xff]  ;;  %v5926_v37 = vld [vmem:[#allocation99_spill] sm:$0xff]  ;;  %p148_p0 = scmp.ge.s32.totalorder %s151_s11, 2  }
  0x4a   : > { %v5927_v35 = vld [vmem:[#allocation38_spill] sm:$0xff]  ;;  %v5928_v34 = vld [vmem:[#allocation37_spill] sm:$0xff]  ;;  %v5929_v33 = vld [vmem:[#allocation36_spill] sm:$0xff] }
  0x4b   : > { %v5930_v32 = vld [vmem:[#allocation35_spill] sm:$0xff]  ;;  %v5931_v31 = vld [vmem:[#allocation76_spill] sm:$0xff]  ;;  %v5932_v30 = vld [vmem:[#allocation93_spill] sm:$0xff] }
  0x4c   : > { %v5933_v28 = vld [vmem:[#allocation124_spill] sm:$0xff]  ;;  %v5934_v27 = vld [vmem:[#allocation30_spill] sm:$0xff]  ;;  %v5935_v26 = vld [vmem:[#allocation29_spill] sm:$0xff] }
  0x4d   : > { %v5936_v25 = vld [vmem:[#allocation28_spill] sm:$0xff]  ;;  %v5937_v24 = vld [vmem:[#allocation27_spill] sm:$0xff]  ;;  %v5939_v22 = vld [vmem:[#allocation77_spill] sm:$0xff] }
  0x4e   : > { %v5938_v23 = vld [vmem:[#allocation75_spill] sm:$0xff]  ;;  %v5942_v19 = vld [vmem:[#allocation22_spill] sm:$0xff]  ;;  %v5943_v18 = vld [vmem:[#allocation21_spill] sm:$0xff] }
  0x4f   : > { %v5940_v21 = vld [vmem:[#allocation107_spill] sm:$0xff]  ;;  %v5944_v17 = vld [vmem:[#allocation20_spill] sm:$0xff]  ;;  %v5948_v11 = vld [vmem:[#allocation14_spill] sm:$0xff] }
  0x50   : > { %v5941_v20 = vld [vmem:[#allocation123_spill] sm:$0xff]  ;;  %v5946_v15 = vld [vmem:[#allocation92_spill] sm:$0xff]  ;;  %v5949_v10 = vld [vmem:[#allocation13_spill] sm:$0xff] }
  0x51   : > { %v5945_v16 = vld [vmem:[#allocation19_spill] sm:$0xff]  ;;  %v5947_v14 = vld [vmem:[#allocation84_spill] sm:$0xff]  ;;  %v5952_v3 = vld [vmem:[#allocation6_spill] sm:$0xff] }
  0x52   : > { %v5950_v6 = vld [vmem:[#allocation83_spill] sm:$0xff]  ;;  %v5953_v2 = vld [vmem:[#allocation5_spill] sm:$0xff]  ;;  %v5954_v9 = vld [vmem:[#allocation12_spill] sm:$0xff] }
  0x53   : > { %v5951_v5 = vld [vmem:[#allocation115_spill] sm:$0xff]  ;;  %v5956_v1 = vld [vmem:[#allocation4_spill] sm:$0xff]  ;;  %v3872_v13 = vld [vmem:[%s4753_s14 + $0x78] sm:$0xff]  }
  0x54   : > { %v5955_v8 = vld [vmem:[#allocation11_spill] sm:$0xff]  ;;  %v3024_v12 = vcombine.high %v5956_v1, %v5954_v9  ;;  %v3873_v52 = vld [vmem:[%s4753_s14 + $0xf8] sm:$0xff]   ;;  %3297 = vmatprep.subr.bf16.mxu0 %v3872_v13  ;;  %v3876_v4 = vld [vmem:[%s4753_s14 + $0x70] sm:$0xff]  }
  0x55   : > { %v5957_v0 = vld [vmem:[#allocation3_spill] sm:$0xff]  ;;  %3361 = vmatprep.subr.bf16.mxu1 %v3873_v52  ;;  %v3877_v36 = vld [vmem:[%s4753_s14 + $0xf0] sm:$0xff]  }
  0x56   : > { %v3022_v29 = vcombine.high %v5957_v0, %v5955_v8  ;;  %1948 = vmatprep.mubr.bf16.mxu1 %v3024_v12  ;;  %v3875_v12 = vld [vmem:[%s4753_s14 + $0xb8] sm:$0xff]   ;;  %v3878_v61 = vld [vmem:[%s4753_s14 + $0x30] sm:$0xff]   ;;  %v3880_v7 = vld [vmem:[%s4753_s14 + $0x68] sm:$0xff]  }
  0x57   : > { %3362 = vmatpush3.bf16.msra.mxu1 %v3875_v12  ;;  %v3879_v45 = vld [vmem:[%s4753_s14 + $0xb0] sm:$0xff]   ;;  %v3881_v13 = vld [vmem:[%s4753_s14 + $0xe8] sm:$0xff]   ;;  %v3884_v12 = vld [vmem:[%s4753_s14 + $0x60] sm:$0xff]  }
  0x58   : > { %1851 = vmatprep.mubr.bf16.mxu0 %v3022_v29  ;;  %v3874_v29 = vld [vmem:[%s4753_s14 + $0x38] sm:$0xff]   ;;  %3363 = vmatprep.subr.bf16.mxu1 %v3877_v36  ;;  %v3882_v52 = vld [vmem:[%s4753_s14 + $0x28] sm:$0xff]   ;;  %v3886_v36 = vld [vmem:[%s4753_s14 + $0x20] sm:$0xff]  }
  0x59   : > { %3298 = vmatpush3.bf16.msra.mxu0 %v3874_v29  ;;  %v3883_v29 = vld [vmem:[%s4753_s14 + $0xa8] sm:$0xff]  }
  0x5a   : > { %3299 = vmatprep.subr.bf16.mxu0 %v3876_v4  ;;  %v3885_v4 = vld [vmem:[%s4753_s14 + $0xe0] sm:$0xff]  }
  0x5b   : > { %3364 = vmatpush3.bf16.msra.mxu1 %v3879_v45  ;;  %v3888_v45 = vld [vmem:[%s4753_s14 + $0x58] sm:$0xff]  }
  0x5c   : > { %3365 = vmatprep.subr.bf16.mxu1 %v3881_v13  ;;  %v3890_v13 = vld [vmem:[%s4753_s14 + $0x18] sm:$0xff]  }
  0x5d   : > { %3300 = vmatpush3.bf16.msra.mxu0 %v3878_v61  ;;  %v3887_v61 = vld [vmem:[%s4753_s14 + $0xa0] sm:$0xff]  }
  0x5e   : > { %3301 = vmatprep.subr.bf16.mxu0 %v3880_v7  ;;  %v3889_v7 = vld [vmem:[%s4753_s14 + $0xd8] sm:$0xff]  }
  0x5f   : > { %3366 = vmatpush3.bf16.msra.mxu1 %v3883_v29  ;;  %v3892_v29 = vld [vmem:[%s4753_s14 + $0x50] sm:$0xff]  }
  0x60   : > { %3367 = vmatprep.subr.bf16.mxu1 %v3885_v4  ;;  %v3894_v4 = vld [vmem:[%s4753_s14 + $0x10] sm:$0xff]  }
  0x61   : > { %3302 = vmatpush3.bf16.msra.mxu0 %v3882_v52  ;;  %v3891_v52 = vld [vmem:[%s4753_s14 + $0x98] sm:$0xff]  }
  0x62   : > { %3303 = vmatprep.subr.bf16.mxu0 %v3884_v12  ;;  %v3893_v12 = vld [vmem:[%s4753_s14 + $0xd0] sm:$0xff]  }
  0x63   : > { %3368 = vmatpush3.bf16.msra.mxu1 %v3887_v61  ;;  %v3896_v61 = vld [vmem:[%s4753_s14 + $0x48] sm:$0xff]  }
  0x64   : > { %3369 = vmatprep.subr.bf16.mxu1 %v3889_v7  ;;  %v3898_v7 = vld [vmem:[%s4753_s14 + $0x8] sm:$0xff]  }
  0x65   : > { %3304 = vmatpush3.bf16.msra.mxu0 %v3886_v36  ;;  %v3895_v36 = vld [vmem:[%s4753_s14 + $0x90] sm:$0xff]  }
  0x66   : > { %3305 = vmatprep.subr.bf16.mxu0 %v3888_v45  ;;  %v3897_v45 = vld [vmem:[%s4753_s14 + $0xc8] sm:$0xff]  }
  0x67   : > { %3370 = vmatpush3.bf16.msra.mxu1 %v3891_v52  ;;  %v3900_v52 = vld [vmem:[%s4753_s14 + $0x40] sm:$0xff]  }
  0x68   : > { %3371 = vmatprep.subr.bf16.mxu1 %v3893_v12  ;;  %v3902_v12 = vld [vmem:[%s4753_s14] sm:$0xff]  }
  0x69   : > { %3306 = vmatpush3.bf16.msra.mxu0 %v3890_v13  ;;  %v3899_v13 = vld [vmem:[%s4753_s14 + $0x88] sm:$0xff]  }
  0x6a   : > { %3307 = vmatprep.subr.bf16.mxu0 %v3892_v29  ;;  %v3901_v29 = vld [vmem:[%s4753_s14 + $0xc0] sm:$0xff]  }
  0x6b   : > { %3372 = vmatpush3.bf16.msra.mxu1 %v3895_v36  ;;  %v3021_v36 = vcombine.low %v5957_v0, %v5955_v8  ;;  %v3907_v0 = vld [vmem:[%s4753_s14 + $0x1b8] sm:$0xff]   ;;  %v3918_v8 = vld [vmem:[%s4753_s14 + $0x1e0] sm:$0xff]  }
  0x6c   : > { %3373 = vmatprep.subr.bf16.mxu1 %v3897_v45  ;;  %v3904_v45 = vld [vmem:[%s4753_s14 + $0x178] sm:$0xff]  }
  0x6d   : > { %3308 = vmatpush3.bf16.msra.mxu0 %v3894_v4  ;;  %v3903_v4 = vld [vmem:[%s4753_s14 + $0x80] sm:$0xff]  }
  0x6e   : > { %3309 = vmatprep.subr.bf16.mxu0 %v3896_v61  ;;  %v3023_v61 = vcombine.low %v5956_v1, %v5954_v9  ;;  %v3037_v1 = vcombine.low %v5945_v16, %v5937_v24  ;;  %v3934_v9 = vld [vmem:[%s4753_s14 + $0x1c0] sm:$0xff]  }
  0x6f   : > { %3374 = vmatpush3.bf16.msra.mxu1 %v3899_v13  ;;  %v3038_v13 = vcombine.high %v5945_v16, %v5937_v24  ;;  %v5978_v16 = vld [vmem:[#allocation40_spill] sm:$0xff] }
  0x70   : > { %3375 = vmatprep.subr.bf16.mxu1 %v3901_v29  ;;  %v3040_v29 = vcombine.high %v5944_v17, %v5936_v25 }
  0x71   : > { %3310 = vmatpush3.bf16.msra.mxu0 %v3898_v7  ;;  %v3905_v7 = vld [vmem:[%s4753_s14 + $0x138] sm:$0xff]  }
  0x72   : > { %3311 = vmatprep.subr.bf16.mxu0 %v3900_v52  ;;  %v3906_v52 = vld [vmem:[%s4753_s14 + $0x1f8] sm:$0xff]  }
  0x73   : > { %3376 = vmatpush3.bf16.msra.mxu1 %v3903_v4  ;;  %v3909_v4 = vld [vmem:[%s4753_s14 + $0x130] sm:$0xff]  }
  0x74   : > { %3489 = vmatprep.subr.bf16.mxu1 %v3906_v52  ;;  %v3913_v52 = vld [vmem:[%s4753_s14 + $0x128] sm:$0xff]  }
  0x75   : > { %3312 = vmatpush3.bf16.msra.mxu0 %v3902_v12  ;;  %v3908_v12 = vld [vmem:[%s4753_s14 + $0x170] sm:$0xff]  }
  0x76   : > { %3425 = vmatprep.subr.bf16.mxu0 %v3904_v45  ;;  %1949 = vmatmul.mubr.bf16.vlgmr.msra.gmra.mxu1 %v3023_v61  ;;  %v3910_v45 = vld [vmem:[%s4753_s14 + $0x1f0] sm:$0xff]   ;;  %v3039_v61 = vcombine.low %v5944_v17, %v5936_v25 }
  0x77   : > { %3490 = vmatpush3.bf16.msra.mxu1 %v3907_v0  ;;  %1956 = vmatprep.mubr.bf16.mxu1 %v3040_v29  ;;  %v3056_v0 = vcombine.high %v5929_v33, %v5922_v41  ;;  %v3914_v29 = vld [vmem:[%s4753_s14 + $0x1e8] sm:$0xff]  }
  0x78   : > { %1852 = vmatmul.mubr.bf16.vlgmr.msra.gmra.mxu0 %v3021_v36  ;;  %v3911_v36 = vld [vmem:[%s4753_s14 + $0x1b0] sm:$0xff]   ;;  %3491 = vmatprep.subr.bf16.mxu1 %v3910_v45  ;;  %v3917_v45 = vld [vmem:[%s4753_s14 + $0x120] sm:$0xff]  }
  0x79   : > { %3426 = vmatpush3.bf16.msra.mxu0 %v3905_v7  ;;  %1859 = vmatprep.mubr.bf16.mxu0 %v3038_v13  ;;  %v3054_v7 = vcombine.high %v5930_v32, %v5923_v40  ;;  %v3912_v13 = vld [vmem:[%s4753_s14 + $0x168] sm:$0xff]  }
  0x7a   : > { %3427 = vmatprep.subr.bf16.mxu0 %v3908_v12  ;;  %v3915_v12 = vld [vmem:[%s4753_s14 + $0x1a8] sm:$0xff]  }
  0x7b   : > { %3492 = vmatpush3.bf16.msra.mxu1 %v3911_v36  ;;  %v3053_v36 = vcombine.low %v5930_v32, %v5923_v40 }
  0x7c   : > { %3493 = vmatprep.subr.bf16.mxu1 %v3914_v29  ;;  %v3922_v29 = vld [vmem:[%s4753_s14 + $0x1d8] sm:$0xff]  }
  0x7d   : > { %3428 = vmatpush3.bf16.msra.mxu0 %v3909_v4  ;;  %v3916_v4 = vld [vmem:[%s4753_s14 + $0x160] sm:$0xff]  }
  0x7e   : > { %3429 = vmatprep.subr.bf16.mxu0 %v3912_v13  ;;  %1957 = vmatmul.mubr.bf16.gmra.mxu1 %v3039_v61  ;;  %v3055_v61 = vcombine.low %v5929_v33, %v5922_v41  ;;  %v3920_v13 = vld [vmem:[%s4753_s14 + $0x158] sm:$0xff]  }
  0x7f   : > { %1964 = vmatprep.mubr.bf16.mxu1 %v3056_v0  ;;  %3494 = vmatpush3.bf16.msra.mxu1 %v3915_v12  ;;  %v3072_v0 = vcombine.high %v5915_v49, %v5908_v57  ;;  %v3923_v12 = vld [vmem:[%s4753_s14 + $0x198] sm:$0xff]  }
  0x80   : > { %1860 = vmatmul.mubr.bf16.gmra.mxu0 %v3037_v1  ;;  %v3919_v1 = vld [vmem:[%s4753_s14 + $0x1a0] sm:$0xff]   ;;  %3495 = vmatprep.subr.bf16.mxu1 %v3918_v8  ;;  %v3925_v8 = vld [vmem:[%s4753_s14 + $0x110] sm:$0xff]  }
  0x81   : > { %1867 = vmatprep.mubr.bf16.mxu0 %v3054_v7  ;;  %3430 = vmatpush3.bf16.msra.mxu0 %v3913_v52  ;;  %v3070_v7 = vcombine.high %v5916_v48, %v5909_v56  ;;  %v3921_v52 = vld [vmem:[%s4753_s14 + $0x118] sm:$0xff]  }
  0x82   : > { %3431 = vmatprep.subr.bf16.mxu0 %v3916_v4  ;;  %v3924_v4 = vld [vmem:[%s4753_s14 + $0x150] sm:$0xff]  }
  0x83   : > { %3496 = vmatpush3.bf16.msra.mxu1 %v3919_v1  ;;  %v3071_v1 = vcombine.low %v5915_v49, %v5908_v57 }
  0x84   : > { %3497 = vmatprep.subr.bf16.mxu1 %v3922_v29  ;;  %v3930_v29 = vld [vmem:[%s4753_s14 + $0x1c8] sm:$0xff]  }
  0x85   : > { %3432 = vmatpush3.bf16.msra.mxu0 %v3917_v45  ;;  %v3926_v45 = vld [vmem:[%s4753_s14 + $0x1d0] sm:$0xff]  }
  0x86   : > { %3433 = vmatprep.subr.bf16.mxu0 %v3920_v13  ;;  %1965 = vmatmul.mubr.bf16.gmra.mxu1 %v3055_v61  ;;  %v3069_v13 = vcombine.low %v5916_v48, %v5909_v56  ;;  %v3086_v61 = vcombine.high %v5910_v55, %v5938_v23 }
  0x87   : > { %1972 = vmatprep.mubr.bf16.mxu1 %v3072_v0  ;;  %3498 = vmatpush3.bf16.msra.mxu1 %v3923_v12  ;;  %v3088_v0 = vcombine.high %v5911_v54, %v5931_v31  ;;  %v3931_v12 = vld [vmem:[%s4753_s14 + $0x188] sm:$0xff]  }
  0x88   : > { %1868 = vmatmul.mubr.bf16.gmra.mxu0 %v3053_v36  ;;  %v3927_v36 = vld [vmem:[%s4753_s14 + $0x190] sm:$0xff]   ;;  %3499 = vmatprep.subr.bf16.mxu1 %v3926_v45  ;;  %v3933_v45 = vld [vmem:[%s4753_s14 + $0x100] sm:$0xff]  }
  0x89   : > { %1875 = vmatprep.mubr.bf16.mxu0 %v3070_v7  ;;  %3434 = vmatpush3.bf16.msra.mxu0 %v3921_v52  ;;  %v3928_v7 = vld [vmem:[%s4753_s14 + $0x148] sm:$0xff]  }
  0x8a   : > { %3435 = vmatprep.subr.bf16.mxu0 %v3924_v4  ;;  %v3929_v52 = vld [vmem:[%s4753_s14 + $0x108] sm:$0xff]   ;;  %v3932_v4 = vld [vmem:[%s4753_s14 + $0x140] sm:$0xff]  }
  0x8b   : > { %3500 = vmatpush3.bf16.msra.mxu1 %v3927_v36  ;;  %v3102_v36 = vcombine.high %v5950_v6, %v5912_v53 }
  0x8c   : > { %3501 = vmatprep.subr.bf16.mxu1 %v3930_v29  ;;  %v3103_v29 = vcombine.low %v5947_v14, %v5946_v15 }
  0x8d   : > { %3436 = vmatpush3.bf16.msra.mxu0 %v3925_v8  ;;  %v3085_v8 = vcombine.low %v5910_v55, %v5938_v23 }
  0x8e   : > { %3437 = vmatprep.subr.bf16.mxu0 %v3928_v7  ;;  %1973 = vmatmul.mubr.bf16.gmra.mxu1 %v3071_v1  ;;  %v3935_v7 = vld [vmem:[%s4753_s14 + $0x180] sm:$0xff]   ;;  %v3936_v1 = vld [vmem:[%s4753_s14 + $0x278] sm:$0xff]  }
  0x8f   : > { %1980 = vmatprep.mubr.bf16.mxu1 %v3088_v0  ;;  %3502 = vmatpush3.bf16.msra.mxu1 %v3931_v12  ;;  %v3938_v0 = vld [vmem:[%s4753_s14 + $0x2f8] sm:$0xff]   ;;  %v3120_v12 = vcombine.high %v5918_v46, %v5905_v60 }
  0x90   : > { %1876 = vmatmul.mubr.bf16.gmra.mxu0 %v3069_v13  ;;  %v3087_v13 = vcombine.low %v5911_v54, %v5931_v31  ;;  %3503 = vmatprep.subr.bf16.mxu1 %v3934_v9  ;;  %v3118_v9 = vcombine.high %v5926_v37, %v5940_v21 }
  0x91   : > { %1883 = vmatprep.mubr.bf16.mxu0 %v3086_v61  ;;  %3438 = vmatpush3.bf16.msra.mxu0 %v3929_v52  ;;  %v3104_v61 = vcombine.high %v5947_v14, %v5946_v15  ;;  %v3101_v52 = vcombine.low %v5950_v6, %v5912_v53  ;;  %v3978_v14 = vld [vmem:[%s4753_s14 + $0x3e8] sm:$0xff]  }
  0x92   : > { %3439 = vmatprep.subr.bf16.mxu0 %v3932_v4  ;;  %v3117_v4 = vcombine.low %v5926_v37, %v5940_v21  ;;  %v6010_v21 = vld [vmem:[#allocation42_spill] sm:$0xff] }
  0x93   : > { %3504 = vmatpush3.bf16.msra.mxu1 %v3935_v7  ;;  %v3136_v7 = vcombine.high %v5919_v44, %v5933_v28 }
  0x94   : > { %3617 = vmatprep.subr.bf16.mxu1 %v3938_v0  ;;  %v3025_v0 = vcombine.low %v5953_v2, %v5949_v10 }
  0x95   : > { %3440 = vmatpush3.bf16.msra.mxu0 %v3933_v45  ;;  %v3119_v45 = vcombine.low %v5918_v46, %v5905_v60 }
  0x96   : > { %3553 = vmatprep.subr.bf16.mxu0 %v3936_v1  ;;  %1981 = vmatmul.mubr.bf16.gmra.mxu1 %v3087_v13  ;;  %v3133_v13 = vcombine.low %v5951_v5, %v5941_v20  ;;  %v3026_v1 = vcombine.high %v5953_v2, %v5949_v10  ;;  %v3959_v2 = vld [vmem:[%s4753_s14 + $0x290] sm:$0xff]  }
  0x97   : > { %1988 = vmatprep.mubr.bf16.mxu1 %v3104_v61  ;;  %v3028_v61 = vcombine.high %v5952_v3, %v5948_v11 }
  0x98   : > { %1884 = vmatmul.mubr.bf16.gmra.mxu0 %v3085_v8  ;;  %v3134_v8 = vcombine.high %v5951_v5, %v5941_v20  ;;  %v5962_v5 = vld [vmem:[#allocation102_spill] sm:$0xff] }
  0x99   : > { %1891 = vmatprep.mubr.bf16.mxu0 %v3102_v36  ;;  %v3135_v36 = vcombine.low %v5919_v44, %v5933_v28 }
  0x9e   : > { %1989 = vmatmul.mubr.bf16.gmra.mxu1 %v3103_v29  ;;  %v3027_v29 = vcombine.low %v5952_v3, %v5948_v11  ;;  %v3968_v3 = vld [vmem:[%s4753_s14 + $0x378] sm:$0xff]   ;;  %v5973_v11 = vld [vmem:[#allocation32_spill] sm:$0xff] }
  0x9f   : > { %1996 = vmatprep.mubr.bf16.mxu1 %v3120_v12  ;;  %v3042_v12 = vcombine.high %v5943_v18, %v5935_v26 }
  0xa0   : > { %1892 = vmatmul.mubr.bf16.gmra.mxu0 %v3101_v52  ;;  %v3937_v52 = vld [vmem:[%s4753_s14 + $0x238] sm:$0xff]  }
  0xa1   : > { %1899 = vmatprep.mubr.bf16.mxu0 %v3118_v9  ;;  %v3939_v9 = vld [vmem:[%s4753_s14 + $0x2b8] sm:$0xff]  }
  0xa6   : > { %1997 = vmatmul.mubr.bf16.gmra.mxu1 %v3119_v45  ;;  %v3044_v45 = vcombine.high %v5942_v19, %v5934_v27 }
  0xa7   : > { %2004 = vmatprep.mubr.bf16.mxu1 %v3136_v7  ;;  %v3942_v7 = vld [vmem:[%s4753_s14 + $0x2f0] sm:$0xff]  }
  0xa8   : > { %1900 = vmatmul.mubr.bf16.gmra.mxu0 %v3117_v4  ;;  %v3940_v4 = vld [vmem:[%s4753_s14 + $0x270] sm:$0xff]  }
  0xa9   : > { %1907 = vmatprep.mubr.bf16.mxu0 %v3134_v8  ;;  %v3941_v8 = vld [vmem:[%s4753_s14 + $0x230] sm:$0xff]  }
  0xae   : > { %2005 = vmatmul.mubr.bf16.gmra.mxu1 %v3135_v36  ;;  %v3944_v36 = vld [vmem:[%s4753_s14 + $0x268] sm:$0xff]  }
  0xaf   : > { %2142 = vmatprep.mubr.bf16.mxu1 %v3028_v61  ;;  %v3041_v61 = vcombine.low %v5943_v18, %v5935_v26 }
  0xb0   : > { %1908 = vmatmul.mubr.bf16.gmra.mxu0 %v3133_v13  ;;  %v3943_v13 = vld [vmem:[%s4753_s14 + $0x2b0] sm:$0xff]  }
  0xb1   : > { %2045 = vmatprep.mubr.bf16.mxu0 %v3026_v1  ;;  %v3946_v1 = vld [vmem:[%s4753_s14 + $0x2e8] sm:$0xff]  }
  0xb6   : > { %2143 = vmatmul.mubr.bf16.vlgmr.msra.gmra.mxu1 %v3027_v29  ;;  %v3945_v29 = vld [vmem:[%s4753_s14 + $0x228] sm:$0xff]  }
  0xb7   : > { %3618 = vmatpush3.bf16.msra.mxu1 %v3939_v9  ;;  %2150 = vmatprep.mubr.bf16.mxu1 %v3044_v45  ;;  %v3060_v9 = vcombine.high %v5927_v35, %v5920_v43  ;;  %v3950_v45 = vld [vmem:[%s4753_s14 + $0x2e0] sm:$0xff]  }
  0xb8   : > { %2046 = vmatmul.mubr.bf16.vlgmr.msra.gmra.mxu0 %v3025_v0  ;;  %3619 = vmatprep.subr.bf16.mxu1 %v3942_v7  ;;  %v3043_v0 = vcombine.low %v5942_v19, %v5934_v27  ;;  %v3951_v7 = vld [vmem:[%s4753_s14 + $0x2a0] sm:$0xff]  }
  0xb9   : > { %3554 = vmatpush3.bf16.msra.mxu0 %v3937_v52  ;;  %2053 = vmatprep.mubr.bf16.mxu0 %v3042_v12  ;;  %v3058_v52 = vcombine.high %v5928_v34, %v5921_v42  ;;  %v3947_v12 = vld [vmem:[%s4753_s14 + $0x2a8] sm:$0xff]   ;;  %v3996_v19 = vld [vmem:[%s4753_s14 + $0x340] sm:$0xff]  }
  0xba   : > { %3555 = vmatprep.subr.bf16.mxu0 %v3940_v4  ;;  %v3948_v4 = vld [vmem:[%s4753_s14 + $0x260] sm:$0xff]  }
  0xbb   : > { %3620 = vmatpush3.bf16.msra.mxu1 %v3943_v13  ;;  %v3952_v13 = vld [vmem:[%s4753_s14 + $0x258] sm:$0xff]  }
  0xbc   : > { %3621 = vmatprep.subr.bf16.mxu1 %v3946_v1  ;;  %v3954_v1 = vld [vmem:[%s4753_s14 + $0x2d8] sm:$0xff]  }
  0xbd   : > { %3556 = vmatpush3.bf16.msra.mxu0 %v3941_v8  ;;  %v3949_v8 = vld [vmem:[%s4753_s14 + $0x220] sm:$0xff]  }
  0xbe   : > { %3557 = vmatprep.subr.bf16.mxu0 %v3944_v36  ;;  %2151 = vmatmul.mubr.bf16.gmra.mxu1 %v3043_v0  ;;  %v3057_v36 = vcombine.low %v5928_v34, %v5921_v42  ;;  %v3074_v0 = vcombine.high %v5914_v50, %v5907_v58 }
  0xbf   : > { %2158 = vmatprep.mubr.bf16.mxu1 %v3060_v9  ;;  %3622 = vmatpush3.bf16.msra.mxu1 %v3947_v12  ;;  %v3955_v9 = vld [vmem:[%s4753_s14 + $0x298] sm:$0xff]   ;;  %v3956_v12 = vld [vmem:[%s4753_s14 + $0x250] sm:$0xff]  }
  0xc0   : > { %2054 = vmatmul.mubr.bf16.gmra.mxu0 %v3041_v61  ;;  %3623 = vmatprep.subr.bf16.mxu1 %v3950_v45  ;;  %v3059_v61 = vcombine.low %v5927_v35, %v5920_v43  ;;  %v3957_v45 = vld [vmem:[%s4753_s14 + $0x210] sm:$0xff]  }
  0xc1   : > { %2061 = vmatprep.mubr.bf16.mxu0 %v3058_v52  ;;  %3558 = vmatpush3.bf16.msra.mxu0 %v3945_v29  ;;  %v3953_v52 = vld [vmem:[%s4753_s14 + $0x218] sm:$0xff]   ;;  %v3076_v29 = vcombine.high %v5913_v51, %v5906_v59 }
  0xc2   : > { %3559 = vmatprep.subr.bf16.mxu0 %v3948_v4  ;;  %v3958_v4 = vld [vmem:[%s4753_s14 + $0x2d0] sm:$0xff]  }
  0xc3   : > { %3624 = vmatpush3.bf16.msra.mxu1 %v3951_v7  ;;  %v3073_v7 = vcombine.low %v5914_v50, %v5907_v58 }
  0xc4   : > { %3625 = vmatprep.subr.bf16.mxu1 %v3954_v1  ;;  %v3090_v1 = vcombine.high %v5924_v39, %v5939_v22 }
  0xc5   : > { %3560 = vmatpush3.bf16.msra.mxu0 %v3949_v8  ;;  %v3960_v8 = vld [vmem:[%s4753_s14 + $0x248] sm:$0xff]  }
  0xc6   : > { %3561 = vmatprep.subr.bf16.mxu0 %v3952_v13  ;;  %2159 = vmatmul.mubr.bf16.gmra.mxu1 %v3059_v61  ;;  %v3962_v13 = vld [vmem:[%s4753_s14 + $0x2c8] sm:$0xff]  }
  0xc7   : > { %2166 = vmatprep.mubr.bf16.mxu1 %v3076_v29  ;;  %3626 = vmatpush3.bf16.msra.mxu1 %v3955_v9  ;;  %v3961_v61 = vld [vmem:[%s4753_s14 + $0x208] sm:$0xff]   ;;  %v3964_v29 = vld [vmem:[%s4753_s14 + $0x240] sm:$0xff]  }
  0xc8   : > { %2062 = vmatmul.mubr.bf16.gmra.mxu0 %v3057_v36  ;;  %3627 = vmatprep.subr.bf16.mxu1 %v3958_v4  ;;  %v3075_v36 = vcombine.low %v5913_v51, %v5906_v59  ;;  %v3966_v9 = vld [vmem:[%s4753_s14 + $0x2c0] sm:$0xff]  }
  0xc9   : > { %2069 = vmatprep.mubr.bf16.mxu0 %v3074_v0  ;;  %3562 = vmatpush3.bf16.msra.mxu0 %v3953_v52  ;;  %v3092_v0 = vcombine.high %v5904_v62, %v5925_v38  ;;  %v3963_v52 = vld [vmem:[%s4753_s14 + $0x288] sm:$0xff]   ;;  %v3967_v4 = vld [vmem:[%s4753_s14 + $0x280] sm:$0xff]  }
  0xca   : > { %3563 = vmatprep.subr.bf16.mxu0 %v3956_v12  ;;  %v3965_v12 = vld [vmem:[%s4753_s14 + $0x200] sm:$0xff]  }
  0xcb   : > { %3628 = vmatpush3.bf16.msra.mxu1 %v3959_v2  ;;  %v3970_v2 = vld [vmem:[%s4753_s14 + $0x3f8] sm:$0xff]  }
  0xcc   : > { %3629 = vmatprep.subr.bf16.mxu1 %v3962_v13  ;;  %v5958_v13 = vld [vmem:[#allocation86_spill] sm:$0xff] }
  0xcd   : > { %3564 = vmatpush3.bf16.msra.mxu0 %v3957_v45  ;;  %v3089_v45 = vcombine.low %v5924_v39, %v5939_v22 }
  0xce   : > { %3565 = vmatprep.subr.bf16.mxu0 %v3960_v8  ;;  %2167 = vmatmul.mubr.bf16.gmra.mxu1 %v3075_v36  ;;  %v3091_v8 = vcombine.low %v5904_v62, %v5925_v38  ;;  %v3108_v36 = vcombine.high %v5958_v13, %v5903_v63 }
  0xcf   : > { %2174 = vmatprep.mubr.bf16.mxu1 %v3092_v0  ;;  %3630 = vmatpush3.bf16.msra.mxu1 %v3963_v52  ;;  %v5959_v0 = vld [vmem:[#allocation109_spill] sm:$0xff] }
  0xd0   : > { %2070 = vmatmul.mubr.bf16.gmra.mxu0 %v3073_v7  ;;  %3631 = vmatprep.subr.bf16.mxu1 %v3966_v9  ;;  %v3106_v7 = vcombine.high %v5917_v47, %v5932_v30  ;;  %v5960_v52 = vld [vmem:[#allocation101_spill] sm:$0xff]  ;;  %v5961_v9 = vld [vmem:[#allocation110_spill] sm:$0xff] }
  0xd1   : > { %2077 = vmatprep.mubr.bf16.mxu0 %v3090_v1  ;;  %3566 = vmatpush3.bf16.msra.mxu0 %v3961_v61  ;;  %v3105_v1 = vcombine.low %v5917_v47, %v5932_v30  ;;  %v3107_v61 = vcombine.low %v5958_v13, %v5903_v63  ;;  %v3124_v6 = vcombine.high %v5962_v5, %v5961_v9  ;;  %v5974_v13 = vld [vmem:[#allocation24_spill] sm:$0xff] }
  0xd2   : > { %3567 = vmatprep.subr.bf16.mxu0 %v3964_v29  ;;  %v3122_v29 = vcombine.high %v5960_v52, %v5959_v0 }
  0xd3   : > { %3632 = vmatpush3.bf16.msra.mxu1 %v3967_v4  ;;  %v5963_v4 = vld [vmem:[#allocation125_spill] sm:$0xff] }
  0xd4   : > { %3745 = vmatprep.subr.bf16.mxu1 %v3970_v2 }
  0xd5   : > { %3568 = vmatpush3.bf16.msra.mxu0 %v3965_v12  ;;  %v3123_v12 = vcombine.low %v5962_v5, %v5961_v9  ;;  %v5969_v5 = vld [vmem:[#allocation16_spill] sm:$0xff] }
  0xd6   : > { %3681 = vmatprep.subr.bf16.mxu0 %v3968_v3  ;;  %2175 = vmatmul.mubr.bf16.gmra.mxu1 %v3091_v8  ;;  %v3121_v3 = vcombine.low %v5960_v52, %v5959_v0  ;;  %v5965_v8 = vld [vmem:[#allocation126_spill] sm:$0xff]  ;;  %v5970_v9 = vld [vmem:[#allocation8_spill] sm:$0xff] }
  0xd7   : > { %2182 = vmatprep.mubr.bf16.mxu1 %v3108_v36  ;;  %v3032_v10 = vcombine.high %v5970_v9, %v5969_v5 }
  0xd8   : > { %2078 = vmatmul.mubr.bf16.gmra.mxu0 %v3089_v45  ;;  %v5964_v45 = vld [vmem:[#allocation117_spill] sm:$0xff] }
  0xd9   : > { %2085 = vmatprep.mubr.bf16.mxu0 %v3106_v7  ;;  %v3138_v2 = vcombine.high %v5964_v45, %v5963_v4  ;;  %v5966_v7 = vld [vmem:[#allocation118_spill] sm:$0xff] }
  0xda   : > { %v3140_v36 = vcombine.high %v5966_v7, %v5965_v8 }
  0xde   : > { %2183 = vmatmul.mubr.bf16.gmra.mxu1 %v3107_v61  ;;  %v5967_v61 = vld [vmem:[#allocation15_spill] sm:$0xff] }
  0xdf   : > { %2190 = vmatprep.mubr.bf16.mxu1 %v3124_v6  ;;  %v3137_v6 = vcombine.low %v5964_v45, %v5963_v4  ;;  %v5971_v4 = vld [vmem:[#allocation31_spill] sm:$0xff] }
  0xe0   : > { %2086 = vmatmul.mubr.bf16.gmra.mxu0 %v3105_v1  ;;  %v3139_v1 = vcombine.low %v5966_v7, %v5965_v8  ;;  %v5972_v7 = vld [vmem:[#allocation23_spill] sm:$0xff] }
  0xe1   : > { %2093 = vmatprep.mubr.bf16.mxu0 %v3122_v29  ;;  %v5968_v29 = vld [vmem:[#allocation7_spill] sm:$0xff]  ;;  %v3046_v8 = vcombine.high %v5972_v7, %v5971_v4  ;;  %v3045_v15 = vcombine.low %v5972_v7, %v5971_v4 }
  0xe2   : > { %v3030_v0 = vcombine.high %v5968_v29, %v5967_v61  ;;  %v3979_v4 = vld [vmem:[%s4753_s14 + $0x3a8] sm:$0xff]   ;;  %v3982_v7 = vld [vmem:[%s4753_s14 + $0x3e0] sm:$0xff]  }
  0xe6   : > { %2191 = vmatmul.mubr.bf16.gmra.mxu1 %v3123_v12  ;;  %v3031_v12 = vcombine.low %v5970_v9, %v5969_v5  ;;  %v3975_v5 = vld [vmem:[%s4753_s14 + $0x3b0] sm:$0xff]   ;;  %v3976_v9 = vld [vmem:[%s4753_s14 + $0x368] sm:$0xff]  }
  0xe7   : > { %2198 = vmatprep.mubr.bf16.mxu1 %v3140_v36  ;;  %v3971_v36 = vld [vmem:[%s4753_s14 + $0x3b8] sm:$0xff]  }
  0xe8   : > { %2094 = vmatmul.mubr.bf16.gmra.mxu0 %v3121_v3  ;;  %v3029_v3 = vcombine.low %v5968_v29, %v5967_v61 }
  0xe9   : > { %2101 = vmatprep.mubr.bf16.mxu0 %v3138_v2  ;;  %v3969_v2 = vld [vmem:[%s4753_s14 + $0x338] sm:$0xff]  }
  0xee   : > { %2199 = vmatmul.mubr.bf16.gmra.mxu1 %v3139_v1  ;;  %v3972_v1 = vld [vmem:[%s4753_s14 + $0x370] sm:$0xff]  }
  0xef   : > { %2336 = vmatprep.mubr.bf16.mxu1 %v3032_v10  ;;  %v3973_v10 = vld [vmem:[%s4753_s14 + $0x330] sm:$0xff]  }
  0xf0   : > { %2102 = vmatmul.mubr.bf16.gmra.mxu0 %v3137_v6  ;;  %v3048_v6 = vcombine.high %v5974_v13, %v5973_v11 }
  0xf1   : > { %2239 = vmatprep.mubr.bf16.mxu0 %v3030_v0  ;;  %v3974_v0 = vld [vmem:[%s4753_s14 + $0x3f0] sm:$0xff]  }
  0xf6   : > { %2337 = vmatmul.mubr.bf16.vlgmr.msra.gmra.mxu1 %v3031_v12  ;;  %v5975_v12 = vld [vmem:[#allocation47_spill] sm:$0xff] }
  0xf7   : > { %3746 = vmatpush3.bf16.msra.mxu1 %v3971_v36  ;;  %2344 = vmatprep.mubr.bf16.mxu1 %v3048_v6  ;;  %v5977_v36 = vld [vmem:[#allocation48_spill] sm:$0xff] }
  0xf8   : > { %2240 = vmatmul.mubr.bf16.vlgmr.msra.gmra.mxu0 %v3029_v3  ;;  %3747 = vmatprep.subr.bf16.mxu1 %v3974_v0  ;;  %v3047_v3 = vcombine.low %v5974_v13, %v5973_v11  ;;  %v3064_v6 = vcombine.high %v5978_v16, %v5977_v36  ;;  %v3980_v0 = vld [vmem:[%s4753_s14 + $0x360] sm:$0xff]   ;;  %v3986_v11 = vld [vmem:[%s4753_s14 + $0x3d8] sm:$0xff]   ;;  %v5982_v13 = vld [vmem:[#allocation56_spill] sm:$0xff] }
  0xf9   : > { %3682 = vmatpush3.bf16.msra.mxu0 %v3969_v2  ;;  %2247 = vmatprep.mubr.bf16.mxu0 %v3046_v8  ;;  %v5976_v2 = vld [vmem:[#allocation39_spill] sm:$0xff] }
  0xfa   : > { %3683 = vmatprep.subr.bf16.mxu0 %v3972_v1  ;;  %v3062_v8 = vcombine.high %v5976_v2, %v5975_v12  ;;  %v3977_v1 = vld [vmem:[%s4753_s14 + $0x328] sm:$0xff]  }
  0xfb   : > { %3748 = vmatpush3.bf16.msra.mxu1 %v3975_v5  ;;  %v3981_v5 = vld [vmem:[%s4753_s14 + $0x320] sm:$0xff]  }
  0xfc   : > { %3749 = vmatprep.subr.bf16.mxu1 %v3978_v14  ;;  %v3061_v14 = vcombine.low %v5976_v2, %v5975_v12  ;;  %v3990_v2 = vld [vmem:[%s4753_s14 + $0x3d0] sm:$0xff]  }
  0xfd   : > { %3684 = vmatpush3.bf16.msra.mxu0 %v3973_v10  ;;  %v3983_v10 = vld [vmem:[%s4753_s14 + $0x3a0] sm:$0xff]   ;;  %v3989_v12 = vld [vmem:[%s4753_s14 + $0x310] sm:$0xff]  }
  0xfe   : > { %3685 = vmatprep.subr.bf16.mxu0 %v3976_v9  ;;  %2345 = vmatmul.mubr.bf16.gmra.mxu1 %v3047_v3  ;;  %v3984_v9 = vld [vmem:[%s4753_s14 + $0x358] sm:$0xff]   ;;  %v5979_v3 = vld [vmem:[#allocation63_spill] sm:$0xff] }
  0xff   : > { %2352 = vmatprep.mubr.bf16.mxu1 %v3064_v6  ;;  %3750 = vmatpush3.bf16.msra.mxu1 %v3979_v4  ;;  %v3985_v4 = vld [vmem:[%s4753_s14 + $0x318] sm:$0xff]  }
 0x100   : > { %2248 = vmatmul.mubr.bf16.gmra.mxu0 %v3045_v15  ;;  %3751 = vmatprep.subr.bf16.mxu1 %v3982_v7  ;;  %v3063_v15 = vcombine.low %v5978_v16, %v5977_v36  ;;  %v3988_v7 = vld [vmem:[%s4753_s14 + $0x350] sm:$0xff]  }
 0x101   : > { %2255 = vmatprep.mubr.bf16.mxu0 %v3062_v8  ;;  %3686 = vmatpush3.bf16.msra.mxu0 %v3977_v1  ;;  %v5980_v8 = vld [vmem:[#allocation55_spill] sm:$0xff]  ;;  %v5981_v1 = vld [vmem:[#allocation64_spill] sm:$0xff] }
 0x102   : > { %3687 = vmatprep.subr.bf16.mxu0 %v3980_v0  ;;  %v3078_v6 = vcombine.high %v5980_v8, %v5979_v3  ;;  %v3080_v17 = vcombine.high %v5982_v13, %v5981_v1  ;;  %v3987_v0 = vld [vmem:[%s4753_s14 + $0x398] sm:$0xff]   ;;  %v5986_v16 = vld [vmem:[#allocation72_spill] sm:$0xff] }
 0x103   : > { %3752 = vmatpush3.bf16.msra.mxu1 %v3983_v10  ;;  %v3992_v10 = vld [vmem:[%s4753_s14 + $0x348] sm:$0xff]  }
 0x104   : > { %3753 = vmatprep.subr.bf16.mxu1 %v3986_v11  ;;  %v3079_v11 = vcombine.low %v5982_v13, %v5981_v1  ;;  %v3997_v1 = vld [vmem:[%s4753_s14 + $0x300] sm:$0xff]   ;;  %v5990_v13 = vld [vmem:[#allocation88_spill] sm:$0xff] }
 0x105   : > { %3688 = vmatpush3.bf16.msra.mxu0 %v3981_v5  ;;  %v3991_v5 = vld [vmem:[%s4753_s14 + $0x390] sm:$0xff]  }
 0x106   : > { %3689 = vmatprep.subr.bf16.mxu0 %v3984_v9  ;;  %2353 = vmatmul.mubr.bf16.gmra.mxu1 %v3063_v15  ;;  %v3077_v9 = vcombine.low %v5980_v8, %v5979_v3  ;;  %v5983_v15 = vld [vmem:[#allocation79_spill] sm:$0xff] }
 0x107   : > { %2360 = vmatprep.mubr.bf16.mxu1 %v3080_v17  ;;  %3754 = vmatpush3.bf16.msra.mxu1 %v3987_v0  ;;  %v3993_v0 = vld [vmem:[%s4753_s14 + $0x308] sm:$0xff]   ;;  %v3999_v3 = vld [vmem:[%s4753_s14 + $0x380] sm:$0xff]  }
 0x108   : > { %2256 = vmatmul.mubr.bf16.gmra.mxu0 %v3061_v14  ;;  %3755 = vmatprep.subr.bf16.mxu1 %v3990_v2  ;;  %v3994_v14 = vld [vmem:[%s4753_s14 + $0x3c8] sm:$0xff]   ;;  %v3998_v2 = vld [vmem:[%s4753_s14 + $0x3c0] sm:$0xff]  }
 0x109   : > { %2263 = vmatprep.mubr.bf16.mxu0 %v3078_v6  ;;  %3690 = vmatpush3.bf16.msra.mxu0 %v3985_v4  ;;  %v5984_v6 = vld [vmem:[#allocation71_spill] sm:$0xff]  ;;  %v5985_v4 = vld [vmem:[#allocation80_spill] sm:$0xff] }
 0x10a   : > { %3691 = vmatprep.subr.bf16.mxu0 %v3988_v7  ;;  %v3094_v17 = vcombine.high %v5984_v6, %v5983_v15  ;;  %v3096_v18 = vcombine.high %v5986_v16, %v5985_v4  ;;  %v3995_v7 = vld [vmem:[%s4753_s14 + $0x388] sm:$0xff]  }
 0x10b   : > { %3756 = vmatpush3.bf16.msra.mxu1 %v3991_v5  ;;  %v3095_v5 = vcombine.low %v5986_v16, %v5985_v4  ;;  %v5988_v8 = vld [vmem:[#allocation87_spill] sm:$0xff]  ;;  %v5994_v4 = vld [vmem:[#allocation104_spill] sm:$0xff] }
 0x10c   : > { %3757 = vmatprep.subr.bf16.mxu1 %v3994_v14  ;;  %v5989_v14 = vld [vmem:[#allocation96_spill] sm:$0xff] }
 0x10d   : > { %3692 = vmatpush3.bf16.msra.mxu0 %v3989_v12  ;;  %v3093_v12 = vcombine.low %v5984_v6, %v5983_v15 }
 0x10e   : > { %3693 = vmatprep.subr.bf16.mxu0 %v3992_v10  ;;  %2361 = vmatmul.mubr.bf16.gmra.mxu1 %v3079_v11  ;;  %v5987_v10 = vld [vmem:[#allocation95_spill] sm:$0xff]  ;;  %v3112_v11 = vcombine.high %v5990_v13, %v5989_v14 }
 0x10f   : > { %2368 = vmatprep.mubr.bf16.mxu1 %v3096_v18  ;;  %3758 = vmatpush3.bf16.msra.mxu1 %v3995_v7  ;;  %v3109_v18 = vcombine.low %v5988_v8, %v5987_v10 }
 0x110   : > { %2264 = vmatmul.mubr.bf16.gmra.mxu0 %v3077_v9  ;;  %3759 = vmatprep.subr.bf16.mxu1 %v3998_v2  ;;  %v3110_v9 = vcombine.high %v5988_v8, %v5987_v10  ;;  %v5993_v2 = vld [vmem:[#allocation112_spill] sm:$0xff] }
 0x111   : > { %2271 = vmatprep.mubr.bf16.mxu0 %v3094_v17  ;;  %3694 = vmatpush3.bf16.msra.mxu0 %v3993_v0  ;;  %v5991_v17 = vld [vmem:[#allocation111_spill] sm:$0xff]  ;;  %v3128_v6 = vcombine.high %v5994_v4, %v5993_v2  ;;  %v5998_v8 = vld [vmem:[#allocation120_spill] sm:$0xff] }
 0x112   : > { %3695 = vmatprep.subr.bf16.mxu0 %v3996_v19  ;;  %v3111_v19 = vcombine.low %v5990_v13, %v5989_v14  ;;  %v5992_v0 = vld [vmem:[#allocation103_spill] sm:$0xff] }
 0x113   : > { %3760 = vmatpush3.bf16.msra.mxu1 %v3999_v3  ;;  %v3126_v7 = vcombine.high %v5992_v0, %v5991_v17  ;;  %v3125_v3 = vcombine.low %v5992_v0, %v5991_v17  ;;  %v6007_v17 = vld [vmem:[#allocation49_spill] sm:$0xff] }
 0x115   : > { %3696 = vmatpush3.bf16.msra.mxu0 %v3997_v1  ;;  %v3127_v1 = vcombine.low %v5994_v4, %v5993_v2  ;;  %v6001_v2 = vld [vmem:[#allocation18_spill] sm:$0xff] }
 0x116   : > { %2369 = vmatmul.mubr.bf16.gmra.mxu1 %v3095_v5  ;;  %v5996_v5 = vld [vmem:[#allocation119_spill] sm:$0xff]  ;;  %v6002_v4 = vld [vmem:[#allocation10_spill] sm:$0xff] }
 0x117   : > { %2376 = vmatprep.mubr.bf16.mxu1 %v3112_v11  ;;  %v5997_v11 = vld [vmem:[#allocation128_spill] sm:$0xff]  ;;  %v3036_v13 = vcombine.high %v6002_v4, %v6001_v2 }
 0x118   : > { %2272 = vmatmul.mubr.bf16.gmra.mxu0 %v3093_v12  ;;  %v5995_v12 = vld [vmem:[#allocation127_spill] sm:$0xff]  ;;  %v3144_v10 = vcombine.high %v5998_v8, %v5997_v11 }
 0x119   : > { %2279 = vmatprep.mubr.bf16.mxu0 %v3110_v9  ;;  %v3142_v9 = vcombine.high %v5996_v5, %v5995_v12 }
 0x11e   : > { %2377 = vmatmul.mubr.bf16.gmra.mxu1 %v3111_v19  ;;  %v5999_v19 = vld [vmem:[#allocation17_spill] sm:$0xff] }
 0x11f   : > { %2384 = vmatprep.mubr.bf16.mxu1 %v3128_v6  ;;  %v3143_v6 = vcombine.low %v5998_v8, %v5997_v11  ;;  %v6005_v8 = vld [vmem:[#allocation34_spill] sm:$0xff] }
 0x120   : > { %2280 = vmatmul.mubr.bf16.gmra.mxu0 %v3109_v18  ;;  %v3141_v18 = vcombine.low %v5996_v5, %v5995_v12  ;;  %v6006_v11 = vld [vmem:[#allocation26_spill] sm:$0xff] }
 0x121   : > { %2287 = vmatprep.mubr.bf16.mxu0 %v3126_v7  ;;  %v6000_v7 = vld [vmem:[#allocation9_spill] sm:$0xff]  ;;  %v3052_v12 = vcombine.high %v6006_v11, %v6005_v8  ;;  %v3051_v16 = vcombine.low %v6006_v11, %v6005_v8 }
 0x122   : > { %v3034_v0 = vcombine.high %v6000_v7, %v5999_v19 }
 0x126   : > { %2385 = vmatmul.mubr.bf16.gmra.mxu1 %v3127_v1  ;;  %v6003_v1 = vld [vmem:[#allocation33_spill] sm:$0xff] }
 0x127   : > { %2392 = vmatprep.mubr.bf16.mxu1 %v3144_v10  ;;  %v3035_v10 = vcombine.low %v6002_v4, %v6001_v2 }
 0x128   : > { %2288 = vmatmul.mubr.bf16.gmra.mxu0 %v3125_v3  ;;  %v3033_v3 = vcombine.low %v6000_v7, %v5999_v19  ;;  %v6008_v19 = vld [vmem:[#allocation41_spill] sm:$0xff] }
 0x129   : > { %2295 = vmatprep.mubr.bf16.mxu0 %v3142_v9  ;;  %v6004_v9 = vld [vmem:[#allocation25_spill] sm:$0xff]  ;;  %v3066_v20 = vcombine.high %v6008_v19, %v6007_v17  ;;  %v3065_v23 = vcombine.low %v6008_v19, %v6007_v17 }
 0x12a   : > { %v3050_v5 = vcombine.high %v6004_v9, %v6003_v1  ;;  %v3049_v2 = vcombine.low %v6004_v9, %v6003_v1 }
 0x12e   : > { %2393 = vmatmul.mubr.bf16.gmra.mxu1 %v3143_v6 }
 0x12f   : > { %2530 = vmatprep.mubr.bf16.mxu1 %v3036_v13 }
 0x130   : > { %2296 = vmatmul.mubr.bf16.gmra.mxu0 %v3141_v18 }
 0x131   : > { %2433 = vmatprep.mubr.bf16.mxu0 %v3034_v0 }
 0x136   : > { %v3377_v15 = vpop.f32.mrf.mxu1  ;;  %2531 = vmatmul.mubr.bf16.vlgmr.msra.gmra.mxu1 %v3035_v10 }
 0x137   : > { %2538 = vmatprep.mubr.bf16.mxu1 %v3052_v12 }
 0x138   : > { %v3313_v14 = vpop.f32.mrf.mxu0  ;;  %2434 = vmatmul.mubr.bf16.vlgmr.msra.gmra.mxu0 %v3033_v3  ;;  %v3378_v0 = vpop.f32.mrf.mxu1 }
 0x139   : > { %2441 = vmatprep.mubr.bf16.mxu0 %v3050_v5  ;;  %v3379_v6 = vadd.f32 %v3378_v0, %v3377_v15  ;;  %v6009_v5 = vld [vmem:[#allocation50_spill] sm:$0xff] }
 0x13a   : > { %v3314_v18 = vpop.f32.mrf.mxu0  ;;  %v3380_v4 = vpop.f32.mrf.mxu1  ;;  %v3068_v12 = vcombine.high %v6010_v21, %v6009_v5 }
 0x13b   : > { %v3315_v13 = vadd.f32 %v3314_v18, %v3313_v14 }
 0x13c   : > { %v3316_v7 = vpop.f32.mrf.mxu0  ;;  %v3381_v18 = vpop.f32.mrf.mxu1 }
 0x13d   : > { %v5089_v3 = vadd.f32 %v3379_v6, %v3315_v13  ;;  %v3382_v15 = vadd.f32 %v3381_v18, %v3380_v4  ;;  %v3067_v4 = vcombine.low %v6010_v21, %v6009_v5  ;;  %v6014_v18 = vld [vmem:[#allocation58_spill] sm:$0xff] }
 0x13e   : > { %v3317_v10 = vpop.f32.mrf.mxu0  ;;  %v3383_v22 = vpop.f32.mrf.mxu1  ;;  %2539 = vmatmul.mubr.bf16.gmra.mxu1 %v3051_v16 }
 0x13f   : > { %v3318_v14 = vadd.f32 %v3317_v10, %v3316_v7  ;;  %2546 = vmatprep.mubr.bf16.mxu1 %v3068_v12  ;;  %v6011_v7 = vld [vmem:[#allocation65_spill] sm:$0xff] }
 0x140   : > { %v3319_v0 = vpop.f32.mrf.mxu0  ;;  %2442 = vmatmul.mubr.bf16.gmra.mxu0 %v3049_v2  ;;  %v3384_v11 = vpop.f32.mrf.mxu1  ;;  %v6012_v2 = vld [vmem:[#allocation57_spill] sm:$0xff] }
 0x141   : > { %2449 = vmatprep.mubr.bf16.mxu0 %v3066_v20  ;;  %v5093_v1 = vadd.f32 %v3382_v15, %v3318_v14  ;;  %v3385_v13 = vadd.f32 %v3384_v11, %v3383_v22  ;;  %v3082_v10 = vcombine.high %v6012_v2, %v6011_v7  ;;  %v6013_v14 = vld [vmem:[#allocation66_spill] sm:$0xff]  ;;  %v3081_v25 = vcombine.low %v6012_v2, %v6011_v7 }
 0x142   : > { %v3320_v8 = vpop.f32.mrf.mxu0  ;;  %v3386_v24 = vpop.f32.mrf.mxu1  ;;  %v3084_v12 = vcombine.high %v6014_v18, %v6013_v14 }
 0x143   : > { %v3321_v9 = vadd.f32 %v3320_v8, %v3319_v0 }
 0x144   : > { %v3322_v6 = vpop.f32.mrf.mxu0  ;;  %v3387_v15 = vpop.f32.mrf.mxu1 }
 0x145   : > { %v5101_v16 = vadd.f32 %v3385_v13, %v3321_v9  ;;  %v3388_v22 = vadd.f32 %v3387_v15, %v3386_v24  ;;  %v3083_v24 = vcombine.low %v6014_v18, %v6013_v14  ;;  %v6018_v15 = vld [vmem:[#allocation74_spill] sm:$0xff] }
 0x146   : > { %v3323_v20 = vpop.f32.mrf.mxu0  ;;  %v3389_v0 = vpop.f32.mrf.mxu1  ;;  %2547 = vmatmul.mubr.bf16.gmra.mxu1 %v3067_v4 }
 0x147   : > { %v3324_v8 = vadd.f32 %v3323_v20, %v3322_v6  ;;  %2554 = vmatprep.mubr.bf16.mxu1 %v3084_v12  ;;  %v6015_v6 = vld [vmem:[#allocation81_spill] sm:$0xff] }
 0x148   : > { %v3325_v11 = vpop.f32.mrf.mxu0  ;;  %2450 = vmatmul.mubr.bf16.gmra.mxu0 %v3065_v23  ;;  %v3390_v21 = vpop.f32.mrf.mxu1  ;;  %v6016_v23 = vld [vmem:[#allocation73_spill] sm:$0xff] }
 0x149   : > { %2457 = vmatprep.mubr.bf16.mxu0 %v3082_v10  ;;  %v5105_v17 = vadd.f32 %v3388_v22, %v3324_v8  ;;  %v3391_v9 = vadd.f32 %v3390_v21, %v3389_v0  ;;  %v3098_v20 = vcombine.high %v6016_v23, %v6015_v6  ;;  %v6017_v8 = vld [vmem:[#allocation82_spill] sm:$0xff]  ;;  %v3097_v27 = vcombine.low %v6016_v23, %v6015_v6 }
 0x14a   : > { %v3326_v5 = vpop.f32.mrf.mxu0  ;;  %v3392_v26 = vpop.f32.mrf.mxu1  ;;  %v3100_v12 = vcombine.high %v6018_v15, %v6017_v8 }
 0x14b   : > { %v3327_v19 = vadd.f32 %v3326_v5, %v3325_v11 }
 0x14c   : > { %v3328_v13 = vpop.f32.mrf.mxu0  ;;  %v3393_v22 = vpop.f32.mrf.mxu1 }
 0x14d   : > { %v5113_v4 = vadd.f32 %v3391_v9, %v3327_v19  ;;  %v3394_v21 = vadd.f32 %v3393_v22, %v3392_v26  ;;  %v3099_v26 = vcombine.low %v6018_v15, %v6017_v8  ;;  %v6022_v22 = vld [vmem:[#allocation90_spill] sm:$0xff] }
 0x14e   : > { %v3329_v10 = vpop.f32.mrf.mxu0  ;;  %v3395_v0 = vpop.f32.mrf.mxu1  ;;  %2555 = vmatmul.mubr.bf16.gmra.mxu1 %v3083_v24 }
 0x14f   : > { %v3330_v5 = vadd.f32 %v3329_v10, %v3328_v13  ;;  %2562 = vmatprep.mubr.bf16.mxu1 %v3100_v12  ;;  %v6019_v13 = vld [vmem:[#allocation97_spill] sm:$0xff] }
 0x150   : > { %v3331_v11 = vpop.f32.mrf.mxu0  ;;  %2458 = vmatmul.mubr.bf16.gmra.mxu0 %v3081_v25  ;;  %v3396_v18 = vpop.f32.mrf.mxu1  ;;  %v6020_v25 = vld [vmem:[#allocation89_spill] sm:$0xff] }
 0x151   : > { %2465 = vmatprep.mubr.bf16.mxu0 %v3098_v20  ;;  %v5117_v2 = vadd.f32 %v3394_v21, %v3330_v5  ;;  %v3397_v19 = vadd.f32 %v3396_v18, %v3395_v0  ;;  %v3114_v10 = vcombine.high %v6020_v25, %v6019_v13  ;;  %v6021_v5 = vld [vmem:[#allocation98_spill] sm:$0xff]  ;;  %v3113_v29 = vcombine.low %v6020_v25, %v6019_v13 }
 0x152   : > { %v3332_v7 = vpop.f32.mrf.mxu0  ;;  %v3398_v28 = vpop.f32.mrf.mxu1  ;;  %v3116_v12 = vcombine.high %v6022_v22, %v6021_v5 }
 0x153   : > { %v3333_v14 = vadd.f32 %v3332_v7, %v3331_v11 }
 0x154   : > { %v3334_v9 = vpop.f32.mrf.mxu0  ;;  %v3399_v21 = vpop.f32.mrf.mxu1 }
 0x155   : > { %v5125_v24 = vadd.f32 %v3397_v19, %v3333_v14  ;;  %v3400_v18 = vadd.f32 %v3399_v21, %v3398_v28  ;;  %v3115_v28 = vcombine.low %v6022_v22, %v6021_v5  ;;  %v6026_v21 = vld [vmem:[#allocation106_spill] sm:$0xff] }
 0x156   : > { %v3335_v20 = vpop.f32.mrf.mxu0  ;;  %v3401_v0 = vpop.f32.mrf.mxu1  ;;  %2563 = vmatmul.mubr.bf16.gmra.mxu1 %v3099_v26 }
 0x157   : > { %v3336_v7 = vadd.f32 %v3335_v20, %v3334_v9  ;;  %2570 = vmatprep.mubr.bf16.mxu1 %v3116_v12  ;;  %v6023_v9 = vld [vmem:[#allocation113_spill] sm:$0xff] }
 0x158   : > { %v3337_v11 = vpop.f32.mrf.mxu0  ;;  %2466 = vmatmul.mubr.bf16.gmra.mxu0 %v3097_v27  ;;  %v3402_v23 = vpop.f32.mrf.mxu1  ;;  %v6024_v27 = vld [vmem:[#allocation105_spill] sm:$0xff] }
 0x159   : > { %2473 = vmatprep.mubr.bf16.mxu0 %v3114_v10  ;;  %v5129_v6 = vadd.f32 %v3400_v18, %v3336_v7  ;;  %v3403_v14 = vadd.f32 %v3402_v23, %v3401_v0  ;;  %v3130_v20 = vcombine.high %v6024_v27, %v6023_v9  ;;  %v6025_v7 = vld [vmem:[#allocation114_spill] sm:$0xff]  ;;  %v3129_v31 = vcombine.low %v6024_v27, %v6023_v9 }
 0x15a   : > { %v3338_v8 = vpop.f32.mrf.mxu0  ;;  %v3404_v30 = vpop.f32.mrf.mxu1  ;;  %v3132_v12 = vcombine.high %v6026_v21, %v6025_v7 }
 0x15b   : > { %v3339_v15 = vadd.f32 %v3338_v8, %v3337_v11 }
 0x15c   : > { %v3340_v19 = vpop.f32.mrf.mxu0  ;;  %v3405_v18 = vpop.f32.mrf.mxu1 }
 0x15d   : > { %v5137_v26 = vadd.f32 %v3403_v14, %v3339_v15  ;;  %v3406_v23 = vadd.f32 %v3405_v18, %v3404_v30  ;;  %v3131_v30 = vcombine.low %v6026_v21, %v6025_v7  ;;  %v6030_v18 = vld [vmem:[#allocation122_spill] sm:$0xff] }
 0x15e   : > { %v3341_v10 = vpop.f32.mrf.mxu0  ;;  %v3407_v0 = vpop.f32.mrf.mxu1  ;;  %2571 = vmatmul.mubr.bf16.gmra.mxu1 %v3115_v28 }
 0x15f   : > { %v3342_v8 = vadd.f32 %v3341_v10, %v3340_v19  ;;  %2578 = vmatprep.mubr.bf16.mxu1 %v3132_v12  ;;  %v6027_v19 = vld [vmem:[#allocation129_spill] sm:$0xff] }
 0x160   : > { %v3343_v11 = vpop.f32.mrf.mxu0  ;;  %2474 = vmatmul.mubr.bf16.gmra.mxu0 %v3113_v29  ;;  %v3408_v25 = vpop.f32.mrf.mxu1  ;;  %v6028_v29 = vld [vmem:[#allocation121_spill] sm:$0xff] }
 0x161   : > { %2481 = vmatprep.mubr.bf16.mxu0 %v3130_v20  ;;  %v5141_v13 = vadd.f32 %v3406_v23, %v3342_v8  ;;  %v3409_v15 = vadd.f32 %v3408_v25, %v3407_v0  ;;  %v3146_v10 = vcombine.high %v6028_v29, %v6027_v19  ;;  %v6029_v8 = vld [vmem:[#allocation130_spill] sm:$0xff]  ;;  %v3145_v33 = vcombine.low %v6028_v29, %v6027_v19 }
 0x162   : > { %v3344_v5 = vpop.f32.mrf.mxu0  ;;  %v3410_v32 = vpop.f32.mrf.mxu1  ;;  %v3148_v12 = vcombine.high %v6030_v18, %v6029_v8 }
 0x163   : > { %v3345_v22 = vadd.f32 %v3344_v5, %v3343_v11 }
 0x164   : > { %v3346_v14 = vpop.f32.mrf.mxu0  ;;  %v3411_v23 = vpop.f32.mrf.mxu1 }
 0x165   : > { %v5149_v28 = vadd.f32 %v3409_v15, %v3345_v22  ;;  %v3412_v25 = vadd.f32 %v3411_v23, %v3410_v32  ;;  %v3147_v32 = vcombine.low %v6030_v18, %v6029_v8 }
 0x166   : > { %v3347_v20 = vpop.f32.mrf.mxu0  ;;  %v3413_v0 = vpop.f32.mrf.mxu1  ;;  %2579 = vmatmul.mubr.bf16.gmra.mxu1 %v3131_v30 }
 0x167   : > { %v3348_v5 = vadd.f32 %v3347_v20, %v3346_v14  ;;  %2586 = vmatprep.mubr.bf16.mxu1 %v3148_v12 }
 0x168   : > { %v3349_v11 = vpop.f32.mrf.mxu0  ;;  %2482 = vmatmul.mubr.bf16.gmra.mxu0 %v3129_v31  ;;  %v3414_v27 = vpop.f32.mrf.mxu1 }
 0x169   : > { %2489 = vmatprep.mubr.bf16.mxu0 %v3146_v10  ;;  %v5153_v9 = vadd.f32 %v3412_v25, %v3348_v5  ;;  %v3415_v22 = vadd.f32 %v3414_v27, %v3413_v0 }
 0x16a   : > { %v3350_v7 = vpop.f32.mrf.mxu0  ;;  %v3416_v34 = vpop.f32.mrf.mxu1 }
 0x16b   : > { %v3351_v21 = vadd.f32 %v3350_v7, %v3349_v11 }
 0x16c   : > { %v3352_v15 = vpop.f32.mrf.mxu0  ;;  %v3417_v10 = vpop.f32.mrf.mxu1 }
 0x16d   : > { %v5159_v14 = vadd.f32 %v3415_v22, %v3351_v21  ;;  %v3418_v20 = vadd.f32 %v3417_v10, %v3416_v34 }
 0x16e   : > { %v3353_v31 = vpop.f32.mrf.mxu0  ;;  %v3419_v12 = vpop.f32.mrf.mxu1  ;;  %2587 = vmatmul.mubr.bf16.gmra.mxu1 %v3147_v32 }
 0x16f   : > { %v3354_v30 = vadd.f32 %v3353_v31, %v3352_v15 }
 0x170   : > { %v3355_v5 = vpop.f32.mrf.mxu0  ;;  %2490 = vmatmul.mubr.bf16.gmra.mxu0 %v3145_v33  ;;  %v3420_v25 = vpop.f32.mrf.mxu1 }
 0x171   : > { %v5161_v7 = vadd.f32 %v3418_v20, %v3354_v30  ;;  %v3421_v11 = vadd.f32 %v3420_v25, %v3419_v12 }
 0x172   : > { %v3356_v27 = vpop.f32.mrf.mxu0  ;;  %v3422_v19 = vpop.f32.mrf.mxu1 }
 0x173   : > { %v3357_v23 = vadd.f32 %v3356_v27, %v3355_v5 }
 0x174   : > { %v3358_v0 = vpop.f32.mrf.mxu0  ;;  %v3423_v8 = vpop.f32.mrf.mxu1 }
 0x175   : > { %v5163_v29 = vadd.f32 %v3421_v11, %v3357_v23  ;;  %v3424_v15 = vadd.f32 %v3423_v8, %v3422_v19 }
 0x176   : > { %v3359_v21 = vpop.f32.mrf.mxu0  ;;  %v3505_v34 = vpop.f32.mrf.mxu1 }
 0x177   : > { %v3360_v22 = vadd.f32 %v3359_v21, %v3358_v0 }
 0x178   : > { %v3441_v31 = vpop.f32.mrf.mxu0  ;;  %v3506_v30 = vpop.f32.mrf.mxu1 }
 0x179   : > { %v5165_v10 = vadd.f32 %v3424_v15, %v3360_v22  ;;  %v3507_v20 = vadd.f32 %v3506_v30, %v3505_v34 }
 0x17a   : > { %v3442_v33 = vpop.f32.mrf.mxu0  ;;  %v3508_v12 = vpop.f32.mrf.mxu1 }
 0x17b   : > { %v3443_v32 = vadd.f32 %v3442_v33, %v3441_v31 }
 0x17c   : > { %v3444_v18 = vpop.f32.mrf.mxu0  ;;  %v3509_v11 = vpop.f32.mrf.mxu1 }
 0x17d   : > { %v2048_v5 = vadd.f32 %v3443_v32, %v5089_v3  ;;  %v3510_v0 = vadd.f32 %v3509_v11, %v3508_v12 }
 0x17e   : > { %v3445_v27 = vpop.f32.mrf.mxu0  ;;  %v3511_v8 = vpop.f32.mrf.mxu1 }
 0x17f   : > { %v5168_v25 = vadd.f32 %v3507_v20, %v2048_v5  ;;  %v3446_v23 = vadd.f32 %v3445_v27, %v3444_v18 }
 0x180   : > { %v3447_v21 = vpop.f32.mrf.mxu0  ;;  %v3512_v33 = vpop.f32.mrf.mxu1 }
 0x181   : > { %v2051_v19 = vadd.f32 %v3446_v23, %v5093_v1  ;;  %v3513_v34 = vadd.f32 %v3512_v33, %v3511_v8 }
 0x182   : > { %v3448_v22 = vpop.f32.mrf.mxu0  ;;  %v3514_v32 = vpop.f32.mrf.mxu1 }
 0x183   : > { %v5171_v15 = vadd.f32 %v3510_v0, %v2051_v19  ;;  %v3449_v31 = vadd.f32 %v3448_v22, %v3447_v21 }
 0x184   : > { %v3450_v30 = vpop.f32.mrf.mxu0  ;;  %v3515_v5 = vpop.f32.mrf.mxu1 }
 0x185   : > { %v2056_v3 = vadd.f32 %v3449_v31, %v5101_v16  ;;  %v3516_v12 = vadd.f32 %v3515_v5, %v3514_v32 }
 0x186   : > { %v3451_v35 = vpop.f32.mrf.mxu0  ;;  %v3517_v23 = vpop.f32.mrf.mxu1 }
 0x187   : > { %v5174_v20 = vadd.f32 %v3513_v34, %v2056_v3  ;;  %v3452_v18 = vadd.f32 %v3451_v35, %v3450_v30 }
 0x188   : > { %v3453_v27 = vpop.f32.mrf.mxu0  ;;  %v3518_v19 = vpop.f32.mrf.mxu1 }
 0x189   : > { %v2059_v1 = vadd.f32 %v3452_v18, %v5105_v17  ;;  %v3519_v8 = vadd.f32 %v3518_v19, %v3517_v23 }
 0x18a   : > { %v3454_v11 = vpop.f32.mrf.mxu0  ;;  %v3520_v31 = vpop.f32.mrf.mxu1 }
 0x18b   : > { %v5177_v0 = vadd.f32 %v3516_v12, %v2059_v1  ;;  %v3455_v21 = vadd.f32 %v3454_v11, %v3453_v27 }
 0x18c   : > { %v3456_v22 = vpop.f32.mrf.mxu0  ;;  %v3521_v30 = vpop.f32.mrf.mxu1 }
 0x18d   : > { %v2064_v16 = vadd.f32 %v3455_v21, %v5113_v4  ;;  %v3522_v3 = vadd.f32 %v3521_v30, %v3520_v31 }
 0x18e   : > { %v3457_v33 = vpop.f32.mrf.mxu0  ;;  %v3523_v18 = vpop.f32.mrf.mxu1 }
 0x18f   : > { %v5180_v34 = vadd.f32 %v3519_v8, %v2064_v16  ;;  %v3458_v35 = vadd.f32 %v3457_v33, %v3456_v22 }
 0x190   : > { %v3459_v32 = vpop.f32.mrf.mxu0  ;;  %v3524_v1 = vpop.f32.mrf.mxu1 }
 0x191   : > { %v2067_v17 = vadd.f32 %v3458_v35, %v5117_v2  ;;  %v3525_v23 = vadd.f32 %v3524_v1, %v3523_v18 }
 0x192   : > { %v3460_v5 = vpop.f32.mrf.mxu0  ;;  %v3526_v21 = vpop.f32.mrf.mxu1 }
 0x193   : > { %v5183_v12 = vadd.f32 %v3522_v3, %v2067_v17  ;;  %v3461_v27 = vadd.f32 %v3460_v5, %v3459_v32 }
 0x194   : > { %v3462_v11 = vpop.f32.mrf.mxu0  ;;  %v3527_v16 = vpop.f32.mrf.mxu1 }
 0x195   : > { %v2072_v4 = vadd.f32 %v3461_v27, %v5125_v24  ;;  %v3528_v31 = vadd.f32 %v3527_v16, %v3526_v21 }
 0x196   : > { %v3463_v19 = vpop.f32.mrf.mxu0  ;;  %v3529_v35 = vpop.f32.mrf.mxu1 }
 0x197   : > { %v5186_v8 = vadd.f32 %v3525_v23, %v2072_v4  ;;  %v3464_v22 = vadd.f32 %v3463_v19, %v3462_v11 }
 0x198   : > { %v3465_v33 = vpop.f32.mrf.mxu0  ;;  %v3530_v17 = vpop.f32.mrf.mxu1 }
 0x199   : > { %v2075_v2 = vadd.f32 %v3464_v22, %v5129_v6  ;;  %v3531_v18 = vadd.f32 %v3530_v17, %v3529_v35 }
 0x19a   : > { %v3466_v30 = vpop.f32.mrf.mxu0  ;;  %v3532_v27 = vpop.f32.mrf.mxu1 }
 0x19b   : > { %v5189_v3 = vadd.f32 %v3528_v31, %v2075_v2  ;;  %v3467_v32 = vadd.f32 %v3466_v30, %v3465_v33 }
 0x19c   : > { %v3468_v5 = vpop.f32.mrf.mxu0  ;;  %v3533_v4 = vpop.f32.mrf.mxu1 }
 0x19d   : > { %v2080_v24 = vadd.f32 %v3467_v32, %v5137_v26  ;;  %v3534_v21 = vadd.f32 %v3533_v4, %v3532_v27 }
 0x19e   : > { %v3469_v1 = vpop.f32.mrf.mxu0  ;;  %v3535_v22 = vpop.f32.mrf.mxu1 }
 0x19f   : > { %v5192_v23 = vadd.f32 %v3531_v18, %v2080_v24  ;;  %v3470_v11 = vadd.f32 %v3469_v1, %v3468_v5 }
 0x1a0   : > { %v3471_v19 = vpop.f32.mrf.mxu0  ;;  %v3536_v2 = vpop.f32.mrf.mxu1 }
 0x1a1   : > { %v2083_v6 = vadd.f32 %v3470_v11, %v5141_v13  ;;  %v3537_v35 = vadd.f32 %v3536_v2, %v3535_v22 }
 0x1a2   : > { %v3472_v16 = vpop.f32.mrf.mxu0  ;;  %v3538_v32 = vpop.f32.mrf.mxu1 }
 0x1a3   : > { %v5195_v31 = vadd.f32 %v3534_v21, %v2083_v6  ;;  %v3473_v33 = vadd.f32 %v3472_v16, %v3471_v19 }
 0x1a4   : > { %v3474_v30 = vpop.f32.mrf.mxu0  ;;  %v3539_v24 = vpop.f32.mrf.mxu1 }
 0x1a5   : > { %v2088_v26 = vadd.f32 %v3473_v33, %v5149_v28  ;;  %v3540_v27 = vadd.f32 %v3539_v24, %v3538_v32 }
 0x1a6   : > { %v3475_v17 = vpop.f32.mrf.mxu0  ;;  %v3541_v11 = vpop.f32.mrf.mxu1 }
 0x1a7   : > { %v5198_v18 = vadd.f32 %v3537_v35, %v2088_v26  ;;  %v3476_v5 = vadd.f32 %v3475_v17, %v3474_v30 }
 0x1a8   : > { %v3477_v1 = vpop.f32.mrf.mxu0  ;;  %v3542_v6 = vpop.f32.mrf.mxu1 }
 0x1a9   : > { %6031 = vst [vmem:[#allocation131_spill] sm:$0xff] %v5198_v18  ;;  %v2091_v13 = vadd.f32 %v3476_v5, %v5153_v9  ;;  %v3543_v22 = vadd.f32 %v3542_v6, %v3541_v11 }
 0x1aa   : > { %v3478_v4 = vpop.f32.mrf.mxu0  ;;  %v3544_v33 = vpop.f32.mrf.mxu1 }
 0x1ab   : > { %v5201_v21 = vadd.f32 %v3540_v27, %v2091_v13  ;;  %v3479_v19 = vadd.f32 %v3478_v4, %v3477_v1 }
 0x1ac   : > { %v3480_v16 = vpop.f32.mrf.mxu0  ;;  %v3545_v26 = vpop.f32.mrf.mxu1 }
 0x1ad   : > { %6032 = vst [vmem:[#allocation132_spill] sm:$0xff] %v5201_v21  ;;  %v2096_v28 = vadd.f32 %v3479_v19, %v5159_v14  ;;  %v3546_v32 = vadd.f32 %v3545_v26, %v3544_v33 }
 0x1ae   : > { %v3481_v2 = vpop.f32.mrf.mxu0  ;;  %v3547_v5 = vpop.f32.mrf.mxu1 }
 0x1af   : > { %v5204_v35 = vadd.f32 %v3543_v22, %v2096_v28  ;;  %v3482_v30 = vadd.f32 %v3481_v2, %v3480_v16 }
 0x1b0   : > { %v3483_v17 = vpop.f32.mrf.mxu0  ;;  %v3548_v13 = vpop.f32.mrf.mxu1 }
 0x1b1   : > { %6033 = vst [vmem:[#allocation133_spill] sm:$0xff] %v5204_v35  ;;  %v2099_v9 = vadd.f32 %v3482_v30, %v5161_v7  ;;  %v3549_v11 = vadd.f32 %v3548_v13, %v3547_v5 }
 0x1b2   : > { %v3484_v24 = vpop.f32.mrf.mxu0  ;;  %v3550_v19 = vpop.f32.mrf.mxu1 }
 0x1b3   : > { %v5207_v27 = vadd.f32 %v3546_v32, %v2099_v9  ;;  %v3485_v1 = vadd.f32 %v3484_v24, %v3483_v17 }
 0x1b4   : > { %v3486_v4 = vpop.f32.mrf.mxu0  ;;  %v3551_v28 = vpop.f32.mrf.mxu1 }
 0x1b5   : > { %6034 = vst [vmem:[#allocation134_spill] sm:$0xff] %v5207_v27  ;;  %v2104_v14 = vadd.f32 %v3485_v1, %v5163_v29  ;;  %v3552_v33 = vadd.f32 %v3551_v28, %v3550_v19 }
 0x1b6   : > { %v3487_v6 = vpop.f32.mrf.mxu0  ;;  %v5213_v30 = vpop.f32.mrf.mxu1 }
 0x1b7   : > { %v5210_v22 = vadd.f32 %v3549_v11, %v2104_v14  ;;  %v3488_v16 = vadd.f32 %v3487_v6, %v3486_v4 }
 0x1b8   : > { %v3569_v2 = vpop.f32.mrf.mxu0  ;;  %v5217_v17 = vpop.f32.mrf.mxu1 }
 0x1b9   : > { %6035 = vst [vmem:[#allocation135_spill] sm:$0xff] %v5210_v22  ;;  %v2107_v7 = vadd.f32 %v3488_v16, %v5165_v10 }
 0x1ba   : > { %v3570_v26 = vpop.f32.mrf.mxu0  ;;  %v5219_v5 = vpop.f32.mrf.mxu1 }
 0x1bb   : > { %v5215_v32 = vadd.f32 %v3552_v33, %v2107_v7 }
 0x1bc   : > { %v3572_v9 = vpop.f32.mrf.mxu0  ;;  %v5221_v24 = vpop.f32.mrf.mxu1 }
 0x1bd   : > { %6036 = vst [vmem:[#allocation136_spill] sm:$0xff] %v5215_v32 }
 0x1be   : > { %v3573_v29 = vpop.f32.mrf.mxu0  ;;  %v5223_v13 = vpop.f32.mrf.mxu1 }
 0x1c0   : > { %v3575_v1 = vpop.f32.mrf.mxu0  ;;  %v5225_v4 = vpop.f32.mrf.mxu1 }
 0x1c2   : > { %v3576_v11 = vpop.f32.mrf.mxu0  ;;  %v5229_v14 = vpop.f32.mrf.mxu1 }
 0x1c4   : > { %v5227_v10 = vpop.f32.mrf.mxu0  ;;  %v5233_v6 = vpop.f32.mrf.mxu1 }
 0x1c6   : > { %v5231_v19 = vpop.f32.mrf.mxu0  ;;  %v5237_v28 = vpop.f32.mrf.mxu1 }
 0x1c8   : > { %v5235_v16 = vpop.f32.mrf.mxu0  ;;  %v5241_v7 = vpop.f32.mrf.mxu1 }
 0x1ca   : > { %v5239_v33 = vpop.f32.mrf.mxu0  ;;  %v5245_v37 = vpop.f32.mrf.mxu1 }
 0x1cc   : > { %v5243_v36 = vpop.f32.mrf.mxu0  ;;  %v5249_v39 = vpop.f32.mrf.mxu1 }
 0x1ce   : > { %v5247_v38 = vpop.f32.mrf.mxu0  ;;  %v5253_v41 = vpop.f32.mrf.mxu1 }
 0x1d0   : > { %v5251_v40 = vpop.f32.mrf.mxu0  ;;  %v5257_v43 = vpop.f32.mrf.mxu1 }
 0x1d2   : > { %v5255_v42 = vpop.f32.mrf.mxu0  ;;  %v5261_v45 = vpop.f32.mrf.mxu1 }
 0x1d4   : > { %v5259_v44 = vpop.f32.mrf.mxu0  ;;  %v5265_v47 = vpop.f32.mrf.mxu1 }
 0x1d6   : > { %v5263_v46 = vpop.f32.mrf.mxu0  ;;  %v5269_v49 = vpop.f32.mrf.mxu1 }
 0x1d8   : > { %v5267_v48 = vpop.f32.mrf.mxu0  ;;  %v5273_v51 = vpop.f32.mrf.mxu1 }
 0x1da   : > { %v5271_v50 = vpop.f32.mrf.mxu0  ;;  %v5277_v53 = vpop.f32.mrf.mxu1 }
 0x1db   : > { %6037 = vst [vmem:[#allocation137_spill] sm:$0xff] %v5277_v53 }
 0x1dc   : > { %v5275_v52 = vpop.f32.mrf.mxu0  ;;  %v5281_v55 = vpop.f32.mrf.mxu1 }
 0x1dd   : > { %6038 = vst [vmem:[#allocation138_spill] sm:$0xff] %v5281_v55 }
 0x1de   : > { %v5279_v54 = vpop.f32.mrf.mxu0  ;;  %v5285_v57 = vpop.f32.mrf.mxu1 }
 0x1df   : > { %6039 = vst [vmem:[#allocation139_spill] sm:$0xff] %v5285_v57 }
 0x1e0   : > { %v5283_v56 = vpop.f32.mrf.mxu0  ;;  %v5289_v59 = vpop.f32.mrf.mxu1 }
 0x1e1   : > { %6040 = vst [vmem:[#allocation140_spill] sm:$0xff] %v5289_v59 }
 0x1e2   : > { %v5287_v58 = vpop.f32.mrf.mxu0  ;;  %v5293_v61 = vpop.f32.mrf.mxu1 }
 0x1e3   : > { %6042 = vst [vmem:[#allocation142_spill] sm:$0xff] %v5293_v61 }
 0x1e4   : > { %v5291_v60 = vpop.f32.mrf.mxu0  ;;  %v5297_v63 = vpop.f32.mrf.mxu1 }
 0x1e5   : > { %6041 = vst [vmem:[#allocation141_spill] sm:$0xff] %v5291_v60  ;;  %6044 = vst [vmem:[#allocation144_spill] sm:$0xff] %v5297_v63 }
 0x1e6   : > { %v5295_v62 = vpop.f32.mrf.mxu0  ;;  %v5301_v22 = vpop.f32.mrf.mxu1 }
 0x1e7   : > { %6043 = vst [vmem:[#allocation143_spill] sm:$0xff] %v5295_v62  ;;  %6046 = vst [vmem:[#allocation146_spill] sm:$0xff] %v5301_v22 }
 0x1e8   : > { %v5299_v32 = vpop.f32.mrf.mxu0  ;;  %v5305_v35 = vpop.f32.mrf.mxu1 }
 0x1e9   : > { %6045 = vst [vmem:[#allocation145_spill] sm:$0xff] %v5299_v32  ;;  %6048 = vst [vmem:[#allocation148_spill] sm:$0xff] %v5305_v35  ;;  %v3571_v32 = vadd.f32 %v3570_v26, %v3569_v2 }
 0x1ea   : > { %v5303_v27 = vpop.f32.mrf.mxu0  ;;  %v5309_v57 = vpop.f32.mrf.mxu1 }
 0x1eb   : > { %6047 = vst [vmem:[#allocation147_spill] sm:$0xff] %v5303_v27  ;;  %6050 = vst [vmem:[#allocation150_spill] sm:$0xff] %v5309_v57  ;;  %v2242_v57 = vadd.f32 %v3571_v32, %v5168_v25 }
 0x1ec   : > { %v5307_v21 = vpop.f32.mrf.mxu0  ;;  %v5313_v60 = vpop.f32.mrf.mxu1 }
 0x1ed   : > { %6049 = vst [vmem:[#allocation149_spill] sm:$0xff] %v5307_v21  ;;  %6052 = vst [vmem:[#allocation152_spill] sm:$0xff] %v5313_v60 }
 0x1ee   : > { %v5311_v59 = vpop.f32.mrf.mxu0  ;;  %v5317_v62 = vpop.f32.mrf.mxu1 }
 0x1ef   : > { %6051 = vst [vmem:[#allocation151_spill] sm:$0xff] %v5311_v59  ;;  %6054 = vst [vmem:[#allocation154_spill] sm:$0xff] %v5317_v62  ;;  %v3574_v59 = vadd.f32 %v3573_v29, %v3572_v9  ;;  %v3635_v62 = vadd.f32 %v5217_v17, %v5213_v30  ;;  %v3580_v30 = vadd.f32 %v5231_v19, %v5227_v10 }
 0x1f0   : > { %v5315_v61 = vpop.f32.mrf.mxu0  ;;  %v5321_v22 = vpop.f32.mrf.mxu1  ;;  %v3586_v19 = vadd.f32 %v5247_v38, %v5243_v36  ;;  %v3589_v36 = vadd.f32 %v5255_v42, %v5251_v40 }
 0x1f1   : > { %6053 = vst [vmem:[#allocation153_spill] sm:$0xff] %v5315_v61  ;;  %6056 = vst [vmem:[#allocation156_spill] sm:$0xff] %v5321_v22  ;;  %v2339_v26 = vadd.f32 %v3635_v62, %v2242_v57  ;;  %v2245_v22 = vadd.f32 %v3574_v59, %v5171_v15 }
 0x1f2   : > { %v5319_v63 = vpop.f32.mrf.mxu0  ;;  %v5325_v35 = vpop.f32.mrf.mxu1  ;;  %v2266_v40 = vadd.f32 %v3589_v36, %v5186_v8 }
 0x1f3   : > { %6055 = vst [vmem:[#allocation155_spill] sm:$0xff] %v5319_v63  ;;  %6058 = vst [vmem:[#allocation158_spill] sm:$0xff] %v5325_v35  ;;  %v3577_v63 = vadd.f32 %v3576_v11, %v3575_v1  ;;  %v3644_v1 = vadd.f32 %v5233_v6, %v5229_v14  ;;  %v3647_v14 = vadd.f32 %v5241_v7, %v5237_v28 }
 0x1f4   : > { %v5323_v27 = vpop.f32.mrf.mxu0  ;;  %v5330_v18 = vpop.f32.mrf.mxu1  ;;  %v3650_v28 = vadd.f32 %v5249_v39, %v5245_v37  ;;  %v3653_v37 = vadd.f32 %v5257_v43, %v5253_v41  ;;  %v3656_v43 = vadd.f32 %v5265_v47, %v5261_v45 }
 0x1f5   : > { %6057 = vst [vmem:[#allocation157_spill] sm:$0xff] %v5323_v27  ;;  %6060 = vst [vmem:[#allocation160_spill] sm:$0xff] %v5330_v18  ;;  %v2250_v29 = vadd.f32 %v3577_v63, %v5174_v20  ;;  %v3583_v63 = vadd.f32 %v5239_v33, %v5235_v16 }
 0x1f6   : > { %v5327_v21 = vpop.f32.mrf.mxu0  ;;  %v3761_v61 = vpop.f32.mrf.mxu1 }
 0x1f7   : > { %6059 = vst [vmem:[#allocation159_spill] sm:$0xff] %v5327_v21  ;;  %v3638_v21 = vadd.f32 %v5221_v24, %v5219_v5  ;;  %v2258_v10 = vadd.f32 %v3583_v63, %v5180_v34 }
 0x1f8   : > { %v3697_v60 = vpop.f32.mrf.mxu0  ;;  %v3762_v55 = vpop.f32.mrf.mxu1 }
 0x1f9   : > { %v3763_v32 = vadd.f32 %v3762_v55, %v3761_v61  ;;  %v2342_v53 = vadd.f32 %v3638_v21, %v2245_v22  ;;  %v2253_v21 = vadd.f32 %v3580_v30, %v5177_v0  ;;  %v2355_v34 = vadd.f32 %v3647_v14, %v2258_v10 }
 0x1fa   : > { %v3698_v2 = vpop.f32.mrf.mxu0  ;;  %v3764_v9 = vpop.f32.mrf.mxu1  ;;  %v2261_v30 = vadd.f32 %v3586_v19, %v5183_v12  ;;  %v3592_v12 = vadd.f32 %v5263_v46, %v5259_v44  ;;  %v3595_v46 = vadd.f32 %v5271_v50, %v5267_v48 }
 0x1fb   : > { %v3699_v27 = vadd.f32 %v3698_v2, %v3697_v60  ;;  %v3641_v60 = vadd.f32 %v5225_v4, %v5223_v13  ;;  %v2350_v16 = vadd.f32 %v3644_v1, %v2253_v21 }
 0x1fc   : > { %v3700_v35 = vpop.f32.mrf.mxu0  ;;  %v3765_v59 = vpop.f32.mrf.mxu1  ;;  %v2269_v44 = vadd.f32 %v3592_v12, %v5189_v3  ;;  %v2274_v50 = vadd.f32 %v3595_v46, %v5192_v23 }
 0x1fd   : > { %v2436_v25 = vadd.f32 %v3699_v27, %v2339_v26  ;;  %v3766_v55 = vadd.f32 %v3765_v59, %v3764_v9  ;;  %v2347_v5 = vadd.f32 %v3641_v60, %v2250_v29 }
 0x1fe   : > { %v3701_v18 = vpop.f32.mrf.mxu0  ;;  %v3767_v61 = vpop.f32.mrf.mxu1  ;;  %v2366_v48 = vadd.f32 %v3656_v43, %v2269_v44  ;;  %v6067_v44 = vld [vmem:[#allocation140_spill] sm:$0xff] }
 0x1ff   : > { %v5340_v17 = vadd.f32 %v3763_v32, %v2436_v25  ;;  %v3702_v57 = vadd.f32 %v3701_v18, %v3700_v35 }
 0x200   : > { %v3703_v62 = vpop.f32.mrf.mxu0  ;;  %v3768_v35 = vpop.f32.mrf.mxu1 }
 0x201   : > { %v3277_v15 = vmul.f32 -1.442695, %v5340_v17  ;;  %v2439_v27 = vadd.f32 %v3702_v57, %v2342_v53  ;;  %v3769_v11 = vadd.f32 %v3768_v35, %v3767_v61  ;;  %v2358_v61 = vadd.f32 %v3650_v28, %v2261_v30 }
 0x202   : > { %v3704_v20 = vpop.f32.mrf.mxu0  ;;  %v3770_v4 = vpop.f32.mrf.mxu1 }
 0x203   : > { %4000 = vpow2.f32 %v3277_v15  ;;  %v5348_v22 = vadd.f32 %v3766_v55, %v2439_v27  ;;  %v3705_v18 = vadd.f32 %v3704_v20, %v3703_v62 }
 0x204   : > { %v3706_v24 = vpop.f32.mrf.mxu0  ;;  %v3771_v26 = vpop.f32.mrf.mxu1 }
 0x205   : > { %v3278_v53 = vmul.f32 -1.442695, %v5348_v22  ;;  %v2444_v13 = vadd.f32 %v3705_v18, %v2347_v5  ;;  %v3772_v9 = vadd.f32 %v3771_v26, %v3770_v4 }
 0x206   : > { %v3707_v0 = vpop.f32.mrf.mxu0  ;;  %v3773_v29 = vpop.f32.mrf.mxu1 }
 0x207   : > { %4002 = vpow2.f32 %v3278_v53  ;;  %v5356_v33 = vadd.f32 %v3769_v11, %v2444_v13  ;;  %v3708_v2 = vadd.f32 %v3707_v0, %v3706_v24  ;;  %v2363_v13 = vadd.f32 %v3653_v37, %v2266_v40 }
 0x208   : > { %v3709_v6 = vpop.f32.mrf.mxu0  ;;  %v3774_v60 = vpop.f32.mrf.mxu1 }
 0x209   : > { %v3279_v25 = vmul.f32 -1.442695, %v5356_v33  ;;  %v2447_v32 = vadd.f32 %v3708_v2, %v2350_v16  ;;  %v3775_v27 = vadd.f32 %v3774_v60, %v3773_v29 }
 0x20a   : > { %v3710_v38 = vpop.f32.mrf.mxu0  ;;  %v3776_v55 = vpop.f32.mrf.mxu1 }
 0x20b   : > { %4004 = vpow2.f32 %v3279_v25  ;;  %v5364_v57 = vadd.f32 %v3772_v9, %v2447_v32  ;;  %v3711_v59 = vadd.f32 %v3710_v38, %v3709_v6  ;;  %v3598_v6 = vadd.f32 %v5279_v54, %v5275_v52 }
 0x20c   : > { %v3712_v7 = vpop.f32.mrf.mxu0  ;;  %v3777_v20 = vpop.f32.mrf.mxu1  ;;  %v3659_v9 = vadd.f32 %v5273_v51, %v5269_v49  ;;  %v3601_v54 = vadd.f32 %v5287_v58, %v5283_v56  ;;  %v6063_v58 = vld [vmem:[#allocation131_spill] sm:$0xff] }
 0x20d   : > { %v3280_v62 = vmul.f32 -1.442695, %v5364_v57  ;;  %v2452_v15 = vadd.f32 %v3711_v59, %v2355_v34  ;;  %v3778_v1 = vadd.f32 %v3777_v20, %v3776_v55  ;;  %v2277_v60 = vadd.f32 %v3598_v6, %v5195_v31  ;;  %v6064_v31 = vld [vmem:[#allocation141_spill] sm:$0xff]  ;;  %v6065_v20 = vld [vmem:[#allocation143_spill] sm:$0xff] }
 0x20e   : > { %v3713_v5 = vpop.f32.mrf.mxu0  ;;  %v3779_v53 = vpop.f32.mrf.mxu1  ;;  %v2371_v59 = vadd.f32 %v3659_v9, %v2274_v50 }
 0x20f   : > { %4006 = vpow2.f32 %v3280_v62  ;;  %v5372_v42 = vadd.f32 %v3775_v27, %v2452_v15  ;;  %v3714_v63 = vadd.f32 %v3713_v5, %v3712_v7  ;;  %v6061_v62 = vld [vmem:[#allocation137_spill] sm:$0xff]  ;;  %v6062_v15 = vld [vmem:[#allocation138_spill] sm:$0xff] }
 0x210   : > { %v4001_v21 = vpop.eup %4000  ;;  %v3715_v39 = vpop.f32.mrf.mxu0  ;;  %v3662_v27 = vadd.f32 %v6062_v15, %v6061_v62  ;;  %v6075_v62 = vld [vmem:[#allocation151_spill] sm:$0xff] }
 0x211   : > { %v2643_v18 = vadd.f32 1.0, %v4001_v21  ;;  %v3281_v35 = vmul.f32 -1.442695, %v5372_v42  ;;  %v2455_v24 = vadd.f32 %v3714_v63, %v2358_v61  ;;  %v3780_v10 = vpop.f32.mrf.mxu1  ;;  %v2282_v63 = vadd.f32 %v3601_v54, %v6063_v58  ;;  %v6076_v58 = vld [vmem:[#allocation146_spill] sm:$0xff] }
 0x212   : > { %v3716_v8 = vpop.f32.mrf.mxu0  ;;  %v3781_v2 = vadd.f32 %v3780_v10, %v3779_v53  ;;  %v3604_v21 = vadd.f32 %v6065_v20, %v6064_v31  ;;  %v6066_v53 = vld [vmem:[#allocation139_spill] sm:$0xff] }
 0x213   : > { %4008 = vrcp.f32 %v2643_v18  ;;  %v5380_v11 = vadd.f32 %v3778_v1, %v2455_v24  ;;  %v3717_v4 = vadd.f32 %v3716_v8, %v3715_v39  ;;  %v3782_v26 = vpop.f32.mrf.mxu1  ;;  %v2374_v39 = vadd.f32 %v3662_v27, %v2277_v60 }
 0x214   : > { %v4003_v41 = vpop.eup %4002  ;;  %4010 = vpow2.f32 %v3281_v35  ;;  %v3718_v19 = vpop.f32.mrf.mxu0  ;;  %v3665_v46 = vadd.f32 %v6067_v44, %v6066_v53  ;;  %v6078_v53 = vld [vmem:[#allocation134_spill] sm:$0xff] }
 0x215   : > { %v2644_v0 = vadd.f32 1.0, %v4003_v41  ;;  %v3282_v16 = vmul.f32 -1.442695, %v5380_v11  ;;  %v2460_v3 = vadd.f32 %v3717_v4, %v2363_v13  ;;  %v3783_v47 = vpop.f32.mrf.mxu1 }
 0x216   : > { %v3719_v14 = vpop.f32.mrf.mxu0  ;;  %v3784_v23 = vadd.f32 %v3783_v47, %v3782_v26  ;;  %v6070_v26 = vld [vmem:[#allocation147_spill] sm:$0xff] }
 0x217   : > { %4012 = vrcp.f32 %v2644_v0  ;;  %v5388_v25 = vadd.f32 %v3781_v2, %v2460_v3  ;;  %v3720_v32 = vadd.f32 %v3719_v14, %v3718_v19  ;;  %v3785_v36 = vpop.f32.mrf.mxu1  ;;  %v2379_v0 = vadd.f32 %v3665_v46, %v2282_v63  ;;  %v6069_v2 = vld [vmem:[#allocation145_spill] sm:$0xff]  ;;  %v6077_v63 = vld [vmem:[#allocation148_spill] sm:$0xff] }
 0x218   : > { %v4005_v45 = vpop.eup %4004  ;;  %4014 = vpow2.f32 %v3282_v16  ;;  %v3721_v29 = vpop.f32.mrf.mxu0  ;;  %v6068_v16 = vld [vmem:[#allocation132_spill] sm:$0xff]  ;;  %v3671_v31 = vadd.f32 %v6077_v63, %v6076_v58  ;;  %v6079_v46 = vld [vmem:[#allocation153_spill] sm:$0xff] }
 0x219   : > { %v2645_v34 = vadd.f32 1.0, %v4005_v45  ;;  %v3283_v30 = vmul.f32 -1.442695, %v5388_v25  ;;  %v2463_v38 = vadd.f32 %v3720_v32, %v2366_v48  ;;  %v3786_v49 = vpop.f32.mrf.mxu1  ;;  %v2285_v3 = vadd.f32 %v3604_v21, %v6068_v16 }
 0x21a   : > { %v3722_v52 = vpop.f32.mrf.mxu0  ;;  %v3787_v40 = vadd.f32 %v3786_v49, %v3785_v36  ;;  %v3607_v48 = vadd.f32 %v6070_v26, %v6069_v2  ;;  %v6082_v2 = vld [vmem:[#allocation152_spill] sm:$0xff] }
 0x21b   : > { %4016 = vrcp.f32 %v2645_v34  ;;  %v5396_v28 = vadd.f32 %v3784_v23, %v2463_v38  ;;  %v3723_v7 = vadd.f32 %v3722_v52, %v3721_v29  ;;  %v3788_v56 = vpop.f32.mrf.mxu1  ;;  %v6071_v29 = vld [vmem:[#allocation142_spill] sm:$0xff]  ;;  %v6072_v34 = vld [vmem:[#allocation144_spill] sm:$0xff] }
 0x21c   : > { %v4007_v51 = vpop.eup %4006  ;;  %4018 = vpow2.f32 %v3283_v30  ;;  %v3724_v55 = vpop.f32.mrf.mxu0  ;;  %v3668_v30 = vadd.f32 %v6072_v34, %v6071_v29  ;;  %v6083_v29 = vld [vmem:[#allocation135_spill] sm:$0xff] }
 0x21d   : > { %v2646_v61 = vadd.f32 1.0, %v4007_v51  ;;  %v3284_v12 = vmul.f32 -1.442695, %v5396_v28  ;;  %v2468_v5 = vadd.f32 %v3723_v7, %v2371_v59  ;;  %v3789_v24 = vpop.f32.mrf.mxu1  ;;  %v6073_v7 = vld [vmem:[#allocation133_spill] sm:$0xff] }
 0x21e   : > { %v3725_v37 = vpop.f32.mrf.mxu0  ;;  %v3790_v41 = vadd.f32 %v3789_v24, %v3788_v56  ;;  %v2382_v60 = vadd.f32 %v3668_v30, %v2285_v3  ;;  %v2290_v49 = vadd.f32 %v3607_v48, %v6073_v7  ;;  %v6074_v51 = vld [vmem:[#allocation149_spill] sm:$0xff]  ;;  %v6081_v3 = vld [vmem:[#allocation150_spill] sm:$0xff] }
 0x21f   : > { %4020 = vrcp.f32 %v2646_v61  ;;  %v5404_v18 = vadd.f32 %v3787_v40, %v2468_v5  ;;  %v3726_v35 = vadd.f32 %v3725_v37, %v3724_v55  ;;  %v3791_v43 = vpop.f32.mrf.mxu1  ;;  %v3610_v15 = vadd.f32 %v6075_v62, %v6074_v51  ;;  %v6084_v30 = vld [vmem:[#allocation157_spill] sm:$0xff]  ;;  %v6087_v51 = vld [vmem:[#allocation156_spill] sm:$0xff] }
 0x220   : > { %v4009_v1 = vpop.eup %4008  ;;  %4022 = vpow2.f32 %v3284_v12  ;;  %v3727_v8 = vpop.f32.mrf.mxu0  ;;  %v3674_v26 = vadd.f32 %v6082_v2, %v6081_v3 }
 0x221   : > { %v4011_v13 = vpop.eup %4010  ;;  %v3285_v4 = vmul.f32 -1.442695, %v5404_v18  ;;  %v2471_v10 = vadd.f32 %v3726_v35, %v2374_v39  ;;  %v2691_v19 = vmul.f32 %v4009_v1, %v5340_v17  ;;  %v3792_v47 = vpop.f32.mrf.mxu1  ;;  %v2387_v1 = vadd.f32 %v3671_v31, %v2290_v49  ;;  %v6086_v49 = vld [vmem:[#allocation154_spill] sm:$0xff]  ;;  %v6088_v31 = vld [vmem:[#allocation136_spill] sm:$0xff] }
 0x222   : > { %v2647_v50 = vadd.f32 1.0, %v4011_v13  ;;  %v3728_v14 = vpop.f32.mrf.mxu0  ;;  %v3793_v59 = vadd.f32 %v3792_v47, %v3791_v43  ;;  %v2293_v44 = vadd.f32 %v3610_v15, %v6078_v53  ;;  %v3677_v62 = vadd.f32 %v6087_v51, %v6086_v49 }
 0x223   : > { %4024 = vpow2.f32 %v3285_v4  ;;  %v5413_v6 = vadd.f32 %v3790_v41, %v2471_v10  ;;  %v3729_v32 = vadd.f32 %v3728_v14, %v3727_v8  ;;  %v2708_v45 = vsel %vm2707_vm0, %v2691_v19, 0.0  ;;  %v3794_v54 = vpop.f32.mrf.mxu1  ;;  %v6080_v8 = vld [vmem:[#allocation155_spill] sm:$0xff] }
 0x224   : > { %v4013_v9 = vpop.eup %4012  ;;  %4026 = vrcp.f32 %v2647_v50  ;;  %v3730_v17 = vpop.f32.mrf.mxu0  ;;  %2709 = vadd.xlane.f32.xlu0 %v2708_v45  ;;  %v3613_v13 = vadd.f32 %v6080_v8, %v6079_v46 }
 0x225   : > { %v4015_v38 = vpop.eup %4014  ;;  %v3286_v23 = vmul.f32 -1.442695, %v5413_v6  ;;  %v2476_v36 = vadd.f32 %v3729_v32, %v2379_v0  ;;  %v2692_v52 = vmul.f32 %v4013_v9, %v5348_v22  ;;  %v3795_v5 = vpop.f32.mrf.mxu1  ;;  %v2390_v9 = vadd.f32 %v3674_v26, %v2293_v44 }
 0x226   : > { %v2648_v27 = vadd.f32 1.0, %v4015_v38  ;;  %v3731_v55 = vpop.f32.mrf.mxu0  ;;  %v3796_v39 = vadd.f32 %v3795_v5, %v3794_v54  ;;  %v2298_v34 = vadd.f32 %v3613_v13, %v6083_v29 }
 0x227   : > { %4028 = vpow2.f32 %v3286_v23  ;;  %v5423_v61 = vadd.f32 %v3793_v59, %v2476_v36  ;;  %v3732_v12 = vadd.f32 %v3731_v55, %v3730_v17  ;;  %v2711_v40 = vsel %vm2707_vm0, %v2692_v52, 0.0  ;;  %v3797_v35 = vpop.f32.mrf.mxu1  ;;  %v6085_v17 = vld [vmem:[#allocation159_spill] sm:$0xff] }
 0x228   : > { %v4017_v56 = vpop.eup %4016  ;;  %4030 = vrcp.f32 %v2648_v27  ;;  %v3733_v22 = vpop.f32.mrf.mxu0  ;;  %2712 = vadd.xlane.f32.xlu0 %v2711_v40  ;;  %v3616_v38 = vadd.f32 %v6085_v17, %v6084_v30 }
 0x229   : > { %v4019_v20 = vpop.eup %4018  ;;  %v3287_v21 = vmul.f32 -1.442695, %v5423_v61  ;;  %v2479_v37 = vadd.f32 %v3732_v12, %v2382_v60  ;;  %v2693_v24 = vmul.f32 %v4017_v56, %v5356_v33  ;;  %v3798_v19 = vpop.f32.mrf.mxu1  ;;  %v2395_v56 = vadd.f32 %v3677_v62, %v2298_v34 }
 0x22a   : > { %v2649_v4 = vadd.f32 1.0, %v4019_v20  ;;  %v3734_v10 = vpop.f32.mrf.mxu0  ;;  %v3799_v32 = vadd.f32 %v3798_v19, %v3797_v35  ;;  %v6089_v35 = vld [vmem:[#allocation158_spill] sm:$0xff] }
 0x22b   : > { %4032 = vpow2.f32 %v3287_v21  ;;  %v5433_v41 = vadd.f32 %v3796_v39, %v2479_v37  ;;  %v3735_v43 = vadd.f32 %v3734_v10, %v3733_v22  ;;  %v2714_v0 = vsel %vm2707_vm0, %v2693_v24, 0.0  ;;  %v3800_v47 = vpop.f32.mrf.mxu1  ;;  %v6090_v24 = vld [vmem:[#allocation160_spill] sm:$0xff] }
 0x22c   : > { %v4021_v16 = vpop.eup %4020  ;;  %4034 = vrcp.f32 %v2649_v4  ;;  %v3736_v33 = vpop.f32.mrf.mxu0  ;;  %2715 = vadd.xlane.f32.xlu1 %v2714_v0  ;;  %v2301_v22 = vadd.f32 %v3616_v38, %v6088_v31 }
 0x22d   : > { %v4023_v48 = vpop.eup %4022  ;;  %v3288_v50 = vmul.f32 -1.442695, %v5433_v41  ;;  %v2484_v14 = vadd.f32 %v3735_v43, %v2387_v1  ;;  %v2694_v45 = vmul.f32 %v4021_v16, %v5364_v57  ;;  %v3801_v52 = vpop.f32.mrf.mxu1  ;;  %v3680_v1 = vadd.f32 %v6090_v24, %v6089_v35 }
 0x22e   : > { %v2650_v23 = vadd.f32 1.0, %v4023_v48  ;;  %v3737_v36 = vpop.f32.mrf.mxu0  ;;  %v3802_v5 = vadd.f32 %v3801_v52, %v3800_v47 }
 0x22f   : > { %4036 = vpow2.f32 %v3288_v50  ;;  %v5443_v59 = vadd.f32 %v3799_v32, %v2484_v14  ;;  %v3738_v54 = vadd.f32 %v3737_v36, %v3736_v33  ;;  %v2717_v60 = vsel %vm2707_vm0, %v2694_v45, 0.0  ;;  %v3803_v40 = vpop.f32.mrf.mxu1 }
 0x230   : > { %v4025_v7 = vpop.eup %4024  ;;  %4038 = vrcp.f32 %v2650_v23  ;;  %v3739_v57 = vpop.f32.mrf.mxu0  ;;  %2718 = vadd.xlane.f32.xlu1 %v2717_v60  ;;  %v2398_v0 = vadd.f32 %v3680_v1, %v2301_v22 }
 0x231   : > { %v4027_v15 = vpop.eup %4026  ;;  %v2651_v27 = vadd.f32 1.0, %v4025_v7  ;;  %v3289_v55 = vmul.f32 -1.442695, %v5443_v59  ;;  %v2487_v12 = vadd.f32 %v3738_v54, %v2390_v9  ;;  %v3804_v37 = vpop.f32.mrf.mxu1 }
 0x232   : > { %v3740_v58 = vpop.f32.mrf.mxu0  ;;  %v2695_v63 = vmul.f32 %v4027_v15, %v5372_v42  ;;  %v3805_v4 = vadd.f32 %v3804_v37, %v3803_v40 }
 0x233   : > { %4040 = vrcp.f32 %v2651_v27  ;;  %v5451_v20 = vadd.f32 %v3802_v5, %v2487_v12  ;;  %v3741_v21 = vadd.f32 %v3740_v58, %v3739_v57  ;;  %v3806_v10 = vpop.f32.mrf.mxu1 }
 0x234   : > { %v4029_v39 = vpop.eup %4028  ;;  %4042 = vpow2.f32 %v3289_v55  ;;  %v3742_v53 = vpop.f32.mrf.mxu0  ;;  %v2720_v44 = vsel %vm2707_vm0, %v2695_v63, 0.0 }
 0x235   : > { %v4031_v46 = vpop.eup %4030  ;;  %v2652_v8 = vadd.f32 1.0, %v4029_v39  ;;  %v3290_v13 = vmul.f32 -1.442695, %v5451_v20  ;;  %v2492_v42 = vadd.f32 %v3741_v21, %v2395_v56  ;;  %2721 = vadd.xlane.f32.xlu0 %v2720_v44  ;;  %v3807_v2 = vpop.f32.mrf.mxu1  ;;  %v2772_v44 = vlaneseq }
 0x236   : > { %v3743_v43 = vpop.f32.mrf.mxu0  ;;  %v2696_v19 = vmul.f32 %v4031_v46, %v5380_v11  ;;  %v3808_v47 = vadd.f32 %v3807_v2, %v3806_v10 }
 0x237   : > { %4044 = vrcp.f32 %v2652_v8  ;;  %v5458_v16 = vadd.f32 %v3805_v4, %v2492_v42  ;;  %v3744_v3 = vadd.f32 %v3743_v43, %v3742_v53  ;;  %v5481_v43 = vshrl.u32 %v2772_v44, 7 }
 0x238   : > { %v4033_v26 = vpop.eup %4032  ;;  %4046 = vpow2.f32 %v3290_v13  ;;  %v2723_v33 = vsel %vm2707_vm0, %v2696_v19, 0.0 }
 0x239   : > { %v4035_v48 = vpop.eup %4034  ;;  %v2653_v50 = vadd.f32 1.0, %v4033_v26  ;;  %v3291_v14 = vmul.f32 -1.442695, %v5458_v16  ;;  %v2495_v32 = vadd.f32 %v3744_v3, %v2398_v0  ;;  %2724 = vadd.xlane.f32.xlu1 %v2723_v33 }
 0x23a   : > { %v2697_v45 = vmul.f32 %v4035_v48, %v5388_v25 }
 0x23b   : > { %4048 = vrcp.f32 %v2653_v50  ;;  %v2592_v11 = vadd.f32 %v3808_v47, %v2495_v32 }
 0x23c   : > { %v4037_v9 = vpop.eup %4036  ;;  %4050 = vpow2.f32 %v3291_v14  ;;  %v2726_v29 = vsel %vm2707_vm0, %v2697_v45, 0.0 }
 0x23d   : > { %v4039_v34 = vpop.eup %4038  ;;  %v2654_v30 = vadd.f32 1.0, %v4037_v9  ;;  %v3292_v17 = vmul.f32 -1.442695, %v2592_v11  ;;  %2727 = vadd.xlane.f32.xlu0 %v2726_v29 }
 0x23e   : > { %v2698_v38 = vmul.f32 %v4039_v34, %v5396_v28 }
 0x23f   : > { %4052 = vrcp.f32 %v2654_v30 }
 0x240   : > { %v4041_v23 = vpop.eup %4040  ;;  %4054 = vpow2.f32 %v3292_v17  ;;  %v2729_v36 = vsel %vm2707_vm0, %v2698_v38, 0.0 }
 0x241   : > { %v4043_v54 = vpop.eup %4042  ;;  %2730 = vadd.xlane.f32.xlu1 %v2729_v36  ;;  %v2699_v25 = vmul.f32 %v4041_v23, %v5404_v18 }
 0x242   : > { %v2655_v52 = vadd.f32 1.0, %v4043_v54 }
 0x243   : > { %v2732_v60 = vsel %vm2707_vm0, %v2699_v25, 0.0 }
 0x244   : > { %v4045_v7 = vpop.eup %4044  ;;  %4056 = vrcp.f32 %v2655_v52  ;;  %2733 = vadd.xlane.f32.xlu0 %v2732_v60 }
 0x245   : > { %v4047_v49 = vpop.eup %4046  ;;  %v2700_v51 = vmul.f32 %v4045_v7, %v5413_v6 }
 0x246   : > { %v2656_v62 = vadd.f32 1.0, %v4047_v49 }
 0x247   : > { %v2735_v28 = vsel %vm2707_vm0, %v2700_v51, 0.0 }
 0x248   : > { %v4049_v57 = vpop.eup %4048  ;;  %4058 = vrcp.f32 %v2656_v62  ;;  %2736 = vadd.xlane.f32.xlu1 %v2735_v28 }
 0x249   : > { %v4051_v15 = vpop.eup %4050  ;;  %v2701_v27 = vmul.f32 %v4049_v57, %v5423_v61 }
 0x24a   : > { %v2657_v55 = vadd.f32 1.0, %v4051_v15 }
 0x24b   : > { %v2738_v18 = vsel %vm2707_vm0, %v2701_v27, 0.0 }
 0x24c   : > { %v4053_v12 = vpop.eup %4052  ;;  %4060 = vrcp.f32 %v2657_v55  ;;  %2739 = vadd.xlane.f32.xlu0 %v2738_v18 }
 0x24d   : > { %v4055_v5 = vpop.eup %4054  ;;  %v2702_v40 = vmul.f32 %v4053_v12, %v5433_v41 }
 0x24e   : > { %v2658_v56 = vadd.f32 1.0, %v4055_v5 }
 0x24f   : > { %v2741_v6 = vsel %vm2707_vm0, %v2702_v40, 0.0 }
 0x250   : > { %4062 = vrcp.f32 %v2658_v56  ;;  %2742 = vadd.xlane.f32.xlu1 %v2741_v6 }
 0x251   : > { %v4057_v58 = vpop.eup %4056 }
 0x252   : > { %v2703_v63 = vmul.f32 %v4057_v58, %v5443_v59 }
 0x254   : > { %v2744_v31 = vsel %vm2707_vm0, %v2703_v63, 0.0 }
 0x255   : > { %v4059_v61 = vpop.eup %4058  ;;  %2745 = vadd.xlane.f32.xlu0 %v2744_v31 }
 0x256   : > { %v2704_v22 = vmul.f32 %v4059_v61, %v5451_v20  ;;  %v2773_v20 = vand.u32 127, %v2772_v44 }
 0x258   : > { %v2747_v21 = vsel %vm2707_vm0, %v2704_v22, 0.0  ;;  %v2778_v42 = vadd.s32 4294967288, %v2773_v20  ;;  %v2785_v4 = vadd.s32 4294967280, %v2773_v20  ;;  %v2792_v19 = vadd.s32 4294967272, %v2773_v20 }
 0x259   : > { %v4061_v37 = vpop.eup %4060  ;;  %2748 = vadd.xlane.f32.xlu1 %v2747_v21  ;;  %v2799_v0 = vadd.s32 4294967264, %v2773_v20  ;;  %v2806_v2 = vadd.s32 4294967256, %v2773_v20  ;;  %v2813_v33 = vadd.s32 4294967248, %v2773_v20  ;;  %v2776_v50 = vsub.s32 %v2773_v20, %v5481_v43 }
 0x25a   : > { %v2705_v41 = vmul.f32 %v4061_v37, %v5458_v16  ;;  %v2781_v3 = vsub.s32 %v2778_v42, %v5481_v43  ;;  %v2788_v26 = vsub.s32 %v2785_v4, %v5481_v43  ;;  %v2795_v14 = vsub.s32 %v2792_v19, %v5481_v43 }
 0x25b   : > { %v2820_v32 = vadd.s32 4294967240, %v2773_v20  ;;  %v2802_v47 = vsub.s32 %v2799_v0, %v5481_v43  ;;  %v2827_v45 = vadd.s32 4294967232, %v2773_v20  ;;  %v2809_v29 = vsub.s32 %v2806_v2, %v5481_v43 }
 0x25c   : > { %v2750_v39 = vsel %vm2707_vm0, %v2705_v41, 0.0  ;;  %v2834_v34 = vadd.s32 4294967224, %v2773_v20  ;;  %v2816_v17 = vsub.s32 %v2813_v33, %v5481_v43  ;;  %v2841_v23 = vadd.s32 4294967216, %v2773_v20 }
 0x25d   : > { %v4063_v35 = vpop.eup %4062  ;;  %2751 = vadd.xlane.f32.xlu0 %v2750_v39  ;;  %v2823_v25 = vsub.s32 %v2820_v32, %v5481_v43  ;;  %v2848_v52 = vadd.s32 4294967208, %v2773_v20  ;;  %v2830_v7 = vsub.s32 %v2827_v45, %v5481_v43  ;;  %v2855_v51 = vadd.s32 4294967200, %v2773_v20  ;;  %v2900_v32 = vld [vmem:[%s5571_s2 + $0x68] sm:$0xff] (%p148_p0)  ;;  %v2898_v45 = vld [vmem:[%s5571_s2 + $0x58] sm:$0xff] (%p148_p0) }
 0x25e   : > { %v2706_v24 = vmul.f32 %v4063_v35, %v2592_v11  ;;  %v2837_v57 = vsub.s32 %v2834_v34, %v5481_v43  ;;  %v2862_v15 = vadd.s32 4294967192, %v2773_v20  ;;  %v2844_v18 = vsub.s32 %v2841_v23, %v5481_v43  ;;  %v2894_v34 = vld [vmem:[%s5571_s2 + $0x38] sm:$0xff] (%p148_p0) }
 0x25f   : > { %v2869_v5 = vadd.s32 4294967184, %v2773_v20  ;;  %v2851_v6 = vsub.s32 %v2848_v52, %v5481_v43  ;;  %v2858_v31 = vsub.s32 %v2855_v51, %v5481_v43  ;;  %v2876_v41 = vadd.s32 4294967176, %v2773_v20  ;;  %v2890_v23 = vld [vmem:[%s5571_s2 + $0x18] sm:$0xff] (%p148_p0)  ;;  %v3293_v51 = vld [vmem:[%s5572_s3] ss:$0 sm:$0xff] (%p148_p0) }
 0x260   : > { %v2753_v1 = vsel %vm2707_vm0, %v2706_v24, 0.0  ;;  %v2865_v37 = vsub.s32 %v2862_v15, %v5481_v43  ;;  %vm4073_vm0 = vmmov (%p148_p0), 0  }
 0x261   : > { %2754 = vadd.xlane.f32.xlu1 %v2753_v1  ;;  %v2872_v1 = vsub.s32 %v2869_v5, %v5481_v43  ;;  %v2879_v42 = vsub.s32 %v2876_v41, %v5481_v43 }
 0x2ad   : > { %v2710_v59 = vpop.xlane.xlu0 %2709 }
 0x2ae   : > { %v2777_v36 = vrot.slane %v2710_v59, %v2776_v50  ;;  %v4072_v50 = vmov (%p148_p0), 0.0  }
 0x2af   :  { %3826 = vmatprep.subr.mxu0 (%p148_p0), %v4072_v50  ;;  %3858 = vmatprep.mubr.msk.f32.mxu0 (%p148_p0), %vm4073_vm0, %v4072_v50 }
 0x2b1   : > { %v2713_v46 = vpop.xlane.xlu0 %2712 }
 0x2b2   : > { %v2782_v9 = vrot.slane %v2713_v46, %v2781_v3 }
 0x2b4   : > { %v2784_v62 = vsel %vm2783_vm1, %v2782_v9, %v2777_v36  ;;  %v2896_v9 = vld [vmem:[%s5571_s2 + $0x48] sm:$0xff] (%p148_p0)  ;;  %v2889_v36 = vld [vmem:[%s5571_s2 + $0x10] sm:$0xff] (%p148_p0) }
 0x2b5   : > { %v2716_v53 = vpop.xlane.xlu1 %2715 }
 0x2b6   : > { %v2789_v30 = vrot.slane %v2716_v53, %v2788_v26 }
 0x2b8   : > { %v2791_v27 = vsel %vm2790_vm2, %v2789_v30, %v2784_v62  ;;  %v2893_v30 = vld [vmem:[%s5571_s2 + $0x30] sm:$0xff] (%p148_p0) }
 0x2b9   : > { %v2719_v8 = vpop.xlane.xlu1 %2718 }
 0x2ba   : > { %v2796_v54 = vrot.slane %v2719_v8, %v2795_v14  ;;  %v2901_v14 = vld [vmem:[%s5571_s2 + $0x70] sm:$0xff] (%p148_p0) }
 0x2bc   : > { %v2798_v40 = vsel %vm2797_vm3, %v2796_v54, %v2791_v27  ;;  %v2888_v54 = vld [vmem:[%s5571_s2 + $0x8] sm:$0xff] (%p148_p0) }
 0x2be   : > { %v2722_v13 = vpop.xlane.xlu0 %2721 }
 0x2bf   : > { %v2803_v60 = vrot.slane %v2722_v13, %v2802_v47  ;;  %v2899_v47 = vld [vmem:[%s5571_s2 + $0x60] sm:$0xff] (%p148_p0) }
 0x2c1   : > { %v2805_v58 = vsel %vm2804_vm4, %v2803_v60, %v2798_v40  ;;  %v4074_v60 = vmov (%p148_p0), 1966171168  }
 0x2c2   : > { %v2725_v10 = vpop.xlane.xlu1 %2724 }
 0x2c3   : > { %v2810_v28 = vrot.slane %v2725_v10, %v2809_v29  ;;  %v2895_v29 = vld [vmem:[%s5571_s2 + $0x40] sm:$0xff] (%p148_p0) }
 0x2c5   : > { %v2812_v22 = vsel %vm2811_vm5, %v2810_v28, %v2805_v58 }
 0x2c6   : > { %v2728_v16 = vpop.xlane.xlu0 %2727 }
 0x2c7   : > { %v2817_v55 = vrot.slane %v2728_v16, %v2816_v17  ;;  %v2892_v17 = vld [vmem:[%s5571_s2 + $0x28] sm:$0xff] (%p148_p0) }
 0x2c9   : > { %v2819_v39 = vsel %vm2818_vm6, %v2817_v55, %v2812_v22 }
 0x2ca   : > { %v2731_v48 = vpop.xlane.xlu1 %2730 }
 0x2cb   : > { %v2824_v56 = vrot.slane %v2731_v48, %v2823_v25  ;;  %v2902_v48 = vld [vmem:[%s5571_s2 + $0x78] sm:$0xff] (%p148_p0)  ;;  %v2887_v25 = vld [vmem:[%s5571_s2] sm:$0xff] (%p148_p0) }
 0x2cc   :  { %3827 = vmatpush3.msra.mxu0 (%p148_p0), %v2902_v48 }
 0x2cd   : > { %v2734_v11 = vpop.xlane.xlu0 %2733  ;;  %v2826_v59 = vsel %vm2825_vm7, %v2824_v56, %v2819_v39  ;;  %3828 = vmatprep.subr.mxu0 (%p148_p0), %v4072_v50 }
 0x2ce   : > { %v2831_v63 = vrot.slane %v2734_v11, %v2830_v7  ;;  %3829 = vmatpush3.msra.mxu0 (%p148_p0), %v2901_v14  ;;  %v2897_v11 = vld [vmem:[%s5571_s2 + $0x50] sm:$0xff] (%p148_p0)  ;;  %v2982_v7 = vunpack.c.l.s4 (%p148_p0), %v4074_v60 }
 0x2cf   :  { %3830 = vmatprep.subr.mxu0 (%p148_p0), %v4072_v50 }
 0x2d0   : > { %v2833_v44 = vsel %vm2832_vm8, %v2831_v63, %v2826_v59  ;;  %3831 = vmatpush3.msra.mxu0 (%p148_p0), %v2900_v32 }
 0x2d1   : > { %v2737_v38 = vpop.xlane.xlu1 %2736  ;;  %3832 = vmatprep.subr.mxu0 (%p148_p0), %v4072_v50 }
 0x2d2   : > { %v2838_v21 = vrot.slane %v2737_v38, %v2837_v57  ;;  %3833 = vmatpush3.msra.mxu0 (%p148_p0), %v2899_v47  ;;  %v2891_v38 = vld [vmem:[%s5571_s2 + $0x20] sm:$0xff] (%p148_p0) }
 0x2d3   :  { %3834 = vmatprep.subr.mxu0 (%p148_p0), %v4072_v50 }
 0x2d4   : > { %v2840_v13 = vsel %vm2839_vm9, %v2838_v21, %v2833_v44  ;;  %3835 = vmatpush3.msra.mxu0 (%p148_p0), %v2898_v45 }
 0x2d5   : > { %v2740_v49 = vpop.xlane.xlu0 %2739  ;;  %3836 = vmatprep.subr.mxu0 (%p148_p0), %v4072_v50 }
 0x2d6   : > { %v2845_v35 = vrot.slane %v2740_v49, %v2844_v18  ;;  %3837 = vmatpush3.msra.mxu0 (%p148_p0), %v2897_v11  ;;  %v2983_v49 = vunpack.c.0.s8 (%p148_p0), %v2982_v7 }
 0x2d7   :  { %3838 = vmatprep.subr.mxu0 (%p148_p0), %v4072_v50 }
 0x2d8   : > { %v2847_v4 = vsel %vm2846_vm10, %v2845_v35, %v2840_v13  ;;  %3839 = vmatpush3.msra.mxu0 (%p148_p0), %v2896_v9  ;;  %v2986_v62 = vsub.s32 (%p148_p0), %v2983_v49, %v5481_v43 }
 0x2d9   : > { %v2743_v12 = vpop.xlane.xlu1 %2742  ;;  %3840 = vmatprep.subr.mxu0 (%p148_p0), %v4072_v50 }
 0x2da   : > { %v2852_v53 = vrot.slane %v2743_v12, %v2851_v6  ;;  %3841 = vmatpush3.msra.mxu0 (%p148_p0), %v2895_v29 }
 0x2db   :  { %3842 = vmatprep.subr.mxu0 (%p148_p0), %v4072_v50 }
 0x2dc   : > { %v2854_v19 = vsel %vm2853_vm11, %v2852_v53, %v2847_v4  ;;  %3843 = vmatpush3.msra.mxu0 (%p148_p0), %v2894_v34 }
 0x2dd   :  { %3844 = vmatprep.subr.mxu0 (%p148_p0), %v4072_v50 }
 0x2de   : > { %v2746_v61 = vpop.xlane.xlu0 %2745  ;;  %3845 = vmatpush3.msra.mxu0 (%p148_p0), %v2893_v30 }
 0x2df   : > { %v2859_v46 = vrot.slane %v2746_v61, %v2858_v31  ;;  %3846 = vmatprep.subr.mxu0 (%p148_p0), %v4072_v50 }
 0x2e0   :  { %3847 = vmatpush3.msra.mxu0 (%p148_p0), %v2892_v17 }
 0x2e1   : > { %v2861_v0 = vsel %vm2860_vm12, %v2859_v46, %v2854_v19  ;;  %3848 = vmatprep.subr.mxu0 (%p148_p0), %v4072_v50 }
 0x2e2   : > { %v2749_v24 = vpop.xlane.xlu1 %2748  ;;  %3849 = vmatpush3.msra.mxu0 (%p148_p0), %v2891_v38 }
 0x2e3   : > { %v2866_v20 = vrot.slane %v2749_v24, %v2865_v37  ;;  %3850 = vmatprep.subr.mxu0 (%p148_p0), %v4072_v50 }
 0x2e4   :  { %3851 = vmatpush3.msra.mxu0 (%p148_p0), %v2890_v23 }
 0x2e5   : > { %v2868_v3 = vsel %vm2867_vm13, %v2866_v20, %v2861_v0  ;;  %3852 = vmatprep.subr.mxu0 (%p148_p0), %v4072_v50 }
 0x2e6   : > { %v2752_v8 = vpop.xlane.xlu0 %2751  ;;  %3853 = vmatpush3.msra.mxu0 (%p148_p0), %v2889_v36 }
 0x2e7   : > { %v2873_v10 = vrot.slane %v2752_v8, %v2872_v1  ;;  %3854 = vmatprep.subr.mxu0 (%p148_p0), %v4072_v50 }
 0x2e8   :  { %3855 = vmatpush3.msra.mxu0 (%p148_p0), %v2888_v54 }
 0x2e9   : > { %v2875_v26 = vsel %vm2874_vm14, %v2873_v10, %v2868_v3  ;;  %3856 = vmatprep.subr.mxu0 (%p148_p0), %v4072_v50 }
 0x2ea   : > { %v2755_v16 = vpop.xlane.xlu1 %2754  ;;  %150 = sbr.rel (!%p148_p0) target bundleno = 66 (0x42), region = 45  ;;  %3857 = vmatpush3.msra.mxu0 (%p148_p0), %v2887_v25 }
 0x2eb   : > { %v2880_v2 = vrot.slane %v2755_v16, %v2879_v42 }
 0x2ed   : > { %v2882_v33 = vsel %vm2881_vm15, %v2880_v2, %v2875_v26 }
 0x2ee   : > { %2885 = vst [vmem:[%s2884_s15] sm:$0x1] %v2882_v33 }
 0x2f5   :  { %v2886_v52 = vld [vmem:[#allocation2] sm:$0x3] }
 0x2f6   :  { %3859 = vmatmul.mubr.f32.vlgmr.msra.gmra.mxu0 %v2886_v52 }
 0x3b6   :  { %v2976_v28 = vpop.f32.mrf.mxu0 }
 0x3b7   :  { %v2977_v57 = vadd.f32 %v3293_v51, %v2976_v28 }
 0x3b8   :  { %v3860_v15 = vpop.f32.mrf.mxu0 }
 0x3b9   :  { %v2987_v27 = vrot.slane %v2977_v57, %v2986_v62 }
 0x3bb   :  { %v2988_v55 = vcombine.high %v2987_v27, %v2987_v27  ;;  %3294 = vst.sshfl [vmem:[%s5573_s4] sm:$0x1 pattern:$0x73625140] %v2987_v27 }
 0x3bd   :  { %3295 = vst.sshfl [vmem:[%s5573_s4 + $0x1] sm:$0x1 pattern:$0x73625140] %v2988_v55 }

</bundles_post_ra>
